<compile_context>
chip_gen: v5e
topology: v5e:2x2
jax: 0.10.0
libtpu: 0.0.40
codegen_flags: <defaults>
</compile_context>

<pallas_src>
import math
from functools import partial

import jax
import jax.numpy as jnp
from jax.experimental import pallas as pl
from jax.experimental.pallas import tpu as pltpu

EPS = 1e-5          # LayerNorm eps (PyTorch default)
NEG_INF = -1e30     # finite stand-in for -inf in the additive mask


def _layer_norm(x, w, b):
    mu = jnp.mean(x, axis=-1, keepdims=True)
    var = jnp.mean(jnp.square(x - mu), axis=-1, keepdims=True)
    return (x - mu) * jax.lax.rsqrt(var + EPS) * w + b


def _gelu_exact(x):
    # nn.GELU() default (approximate='none'): 0.5*x*(1+erf(x/sqrt(2)))
    return 0.5 * x * (1.0 + jax.lax.erf(x * (1.0 / math.sqrt(2.0))))


# ----------------------------------------------------------------------------
# Fused ResidualAttentionBlock kernel.  One grid step == Bt batch elements.
# ----------------------------------------------------------------------------
def resblock_kernel(H, x_ref, mask_ref,
                    ln1w_ref, ln1b_ref, wqkv_ref, bqkv_ref, wo_ref, bo_ref,
                    ln2w_ref, ln2b_ref, wfc_ref, bfc_ref, wpr_ref, bpr_ref,
                    o_ref):
    Bt, L, W = x_ref.shape
    Dh = W // H
    bf16 = jnp.bfloat16

    # Residual stream kept in f32 inside the kernel; streamed HBM<->VMEM as bf16.
    x = x_ref[...].astype(jnp.float32).reshape(Bt * L, W)
    mask = mask_ref[...]                               # (L, L) additive, f32

    # ---------------- attention branch (pre-LN) ----------------
    h = _layer_norm(x, ln1w_ref[...], ln1b_ref[...])
    qkv = jnp.dot(h.astype(bf16), wqkv_ref[...],
                  preferred_element_type=jnp.float32) + bqkv_ref[...]
    qkv = qkv.astype(bf16)                             # (Bt*L, 3W) MXU inputs
    wo = wo_ref[...]                                   # (W, W) bf16

    acc = jnp.zeros((Bt * L, W), jnp.float32)          # attn output (pre-bias)
    for hd in range(H):                                # static loop, H is small
        c0 = hd * Dh
        q_h = qkv[:, c0:c0 + Dh].reshape(Bt, L, Dh)
        k_h = qkv[:, W + c0:W + c0 + Dh].reshape(Bt, L, Dh)
        v_h = qkv[:, 2 * W + c0:2 * W + c0 + Dh].reshape(Bt, L, Dh)
        # scores in 'nt' form (no explicit K transpose); the 1/sqrt(Dh) scale
        # is pre-folded into the Q weights; mask is additive (MHA semantics).
        s = jnp.einsum('bqd,bkd->bqk', q_h, k_h,
                       preferred_element_type=jnp.float32) + mask
        s = s - jnp.max(s, axis=-1, keepdims=True)
        p = jnp.exp(s)
        p = p * pl.reciprocal(jnp.sum(p, axis=-1, keepdims=True), approx=True)
        ctx = jnp.einsum('bqk,bkd->bqd', p.astype(bf16), v_h,
                         preferred_element_type=jnp.float32)       # (Bt, L, Dh)
        # Accumulate this head's out-projection contribution directly
        # (equivalent to concat-over-heads followed by one big matmul).
        acc = acc + jnp.dot(ctx.reshape(Bt * L, Dh).astype(bf16),
                            wo[c0:c0 + Dh, :],
                            preferred_element_type=jnp.float32)    # (Bt*L, W)

    x = x + acc + bo_ref[...]                          # residual (ls_1 = Identity)

    # ---------------- MLP branch (pre-LN) ----------------
    h2 = _layer_norm(x, ln2w_ref[...], ln2b_ref[...])
    ff = jnp.dot(h2.astype(bf16), wfc_ref[...],
                 preferred_element_type=jnp.float32) + bfc_ref[...]
    ff = _gelu_exact(ff)                               # exact erf GELU, f32
    ff = jnp.dot(ff.astype(bf16), wpr_ref[...],
                 preferred_element_type=jnp.float32) + bpr_ref[...]
    x = x + ff                                         # residual (ls_2 = Identity)

    o_ref[...] = x.reshape(Bt, L, W).astype(o_ref.dtype)


def _pick_bt(B, L, cap=8):
    """Largest divisor of B (<=cap) aiming for >=256 rows per matmul slab."""
    target = min(cap, max(1, (256 + L - 1) // L))
    bt = 1
    for c in range(1, B + 1):
        if B % c == 0 and c <= target:
            bt = c
    return bt


def run_resblock(x, mask, p, heads, *, block_batch=None):
    B, L, W = x.shape
    assert W % heads == 0
    Wm = p["fc_w_t"].shape[1]
    Bt = block_batch if block_batch is not None else _pick_bt(B, L)
    assert B % Bt == 0

    def const(shape):
        return pl.BlockSpec(shape, lambda b: (0,) * len(shape))

    return pl.pallas_call(
        partial(resblock_kernel, heads),
        out_shape=jax.ShapeDtypeStruct((B, L, W), x.dtype),
        grid=(B // Bt,),
        in_specs=[
            pl.BlockSpec((Bt, L, W), lambda b: (b, 0, 0)),   # x (bf16)
            const((L, L)),                                   # additive attn mask (f32)
            const((1, W)), const((1, W)),                    # ln_1 w, b (f32)
            const((W, 3 * W)), const((1, 3 * W)),            # in_proj^T (bf16), bias (f32, Q pre-scaled)
            const((W, W)), const((1, W)),                    # out_proj^T (bf16), bias (f32)
            const((1, W)), const((1, W)),                    # ln_2 w, b (f32)
            const((W, Wm)), const((1, Wm)),                  # c_fc^T (bf16), bias (f32)
            const((Wm, W)), const((1, W)),                   # c_proj^T (bf16), bias (f32)
        ],
        out_specs=pl.BlockSpec((Bt, L, W), lambda b: (b, 0, 0)),
        compiler_params=pltpu.CompilerParams(
            dimension_semantics=("parallel",),               # batch is independent -> 2 TCs on v7x
            vmem_limit_bytes=48 * 1024 * 1024,
        ),
    )(x, mask,
      p["ln1_w"], p["ln1_b"], p["qkv_w_t"], p["qkv_b"], p["out_w_t"], p["out_b"],
      p["ln2_w"], p["ln2_b"], p["fc_w_t"], p["fc_b"], p["pr_w_t"], p["pr_b"])


# ----------------------------------------------------------------------------
# Deterministic parameters (weights pre-transposed to (in, out), bf16 matmul
# weights, attention scale folded into the Q rows of in_proj).
# ----------------------------------------------------------------------------
def init_block_params(key, width, heads, mlp_ratio=4.0):
    mlp_width = int(width * mlp_ratio)
    attn_std = width ** -0.5
    proj_std = 0.5 * attn_std
    fc_std = (2 * width) ** -0.5
    dh = width // heads
    scale = dh ** -0.5
    f32, bf16 = jnp.float32, jnp.bfloat16

    ks = jax.random.split(key, 12)
    qkv_w = attn_std * jax.random.normal(ks[0], (3 * width, width), f32)   # (3W, W) like PyTorch
    qkv_b = 0.02 * jax.random.normal(ks[1], (3 * width,), f32)
    out_w = proj_std * jax.random.normal(ks[2], (width, width), f32)
    out_b = 0.02 * jax.random.normal(ks[3], (width,), f32)
    fc_w = fc_std * jax.random.normal(ks[4], (mlp_width, width), f32)
    fc_b = 0.02 * jax.random.normal(ks[5], (mlp_width,), f32)
    pr_w = proj_std * jax.random.normal(ks[6], (width, mlp_width), f32)
    pr_b = 0.02 * jax.random.normal(ks[7], (width,), f32)

    # Fold 1/sqrt(Dh) into the Q portion of in_proj (exact math identity).
    qkv_w = qkv_w.at[:width].multiply(scale)
    qkv_b = qkv_b.at[:width].multiply(scale)

    return dict(
        ln1_w=(1.0 + 0.1 * jax.random.normal(ks[8], (1, width), f32)),
        ln1_b=0.05 * jax.random.normal(ks[9], (1, width), f32),
        qkv_w_t=qkv_w.T.astype(bf16), qkv_b=qkv_b.reshape(1, -1),
        out_w_t=out_w.T.astype(bf16), out_b=out_b.reshape(1, -1),
        ln2_w=(1.0 + 0.1 * jax.random.normal(ks[10], (1, width), f32)),
        ln2_b=0.05 * jax.random.normal(ks[11], (1, width), f32),
        fc_w_t=fc_w.T.astype(bf16), fc_b=fc_b.reshape(1, -1),
        pr_w_t=pr_w.T.astype(bf16), pr_b=pr_b.reshape(1, -1),
    )


# ----------------------------------------------------------------------------
# Pure-JAX f32 reference (same math as the PyTorch block; scale pre-folded).
# ----------------------------------------------------------------------------
def resblock_reference(x, mask, p, H):
    xf = x.astype(jnp.float32)
    B, L, W = xf.shape
    Dh = W // H

    h = _layer_norm(xf, p["ln1_w"], p["ln1_b"])
    qkv = h @ p["qkv_w_t"].astype(jnp.float32) + p["qkv_b"]
    q, k, v = jnp.split(qkv, 3, axis=-1)
    q = q.reshape(B, L, H, Dh).transpose(0, 2, 1, 3)
    k = k.reshape(B, L, H, Dh).transpose(0, 2, 1, 3)
    v = v.reshape(B, L, H, Dh).transpose(0, 2, 1, 3)
    s = jnp.einsum("bhld,bhmd->bhlm", q, k) + mask
    pr = jax.nn.softmax(s, axis=-1)
    ctx = jnp.einsum("bhlm,bhmd->bhld", pr, v).transpose(0, 2, 1, 3).reshape(B, L, W)
    attn = ctx @ p["out_w_t"].astype(jnp.float32) + p["out_b"]
    xf = xf + attn

    h2 = _layer_norm(xf, p["ln2_w"], p["ln2_b"])
    ff = h2 @ p["fc_w_t"].astype(jnp.float32) + p["fc_b"]
    ff = _gelu_exact(ff)
    ff = ff @ p["pr_w_t"].astype(jnp.float32) + p["pr_b"]
    return xf + ff


if __name__ == "__main__":
    B, L, W, H = 2, 8, 32, 4          # toy shapes; real CLIP widths (512/768) are lane-aligned
    key = jax.random.PRNGKey(0)
    kx, kp = jax.random.split(key)

    params = init_block_params(kp, W, H, mlp_ratio=4.0)
    x = jax.random.normal(kx, (B, L, W), jnp.float32).astype(jnp.bfloat16)
    # build_attention_mask()-style causal additive mask (float mask == additive in MHA)
    mask = jnp.triu(jnp.full((L, L), NEG_INF, jnp.float32), k=1)

    out = run_resblock(x, mask, params, H)
    out = jax.block_until_ready(out)

    assert out.shape == (B, L, W) and out.dtype == jnp.bfloat16
    assert bool(jnp.all(jnp.isfinite(out)))

    ref = resblock_reference(x, mask, params, H)
    err = float(jnp.max(jnp.abs(out.astype(jnp.float32) - ref)))
    tol = 3e-2 + 3e-2 * float(jnp.max(jnp.abs(ref)))
    assert err < tol, f"max abs err {err} exceeds tol {tol}"

    print("KERNEL_OK")
</pallas_src>

<mosaic_0001>
module attributes {stable_mosaic.version = 11 : i64} {
  func.func @resblock_kernel(%arg0: i32, %arg1: memref<2x8x32xbf16, #tpu.memory_space<vmem>>, %arg2: memref<8x8xf32, #tpu.memory_space<vmem>>, %arg3: memref<1x32xf32, #tpu.memory_space<vmem>>, %arg4: memref<1x32xf32, #tpu.memory_space<vmem>>, %arg5: memref<32x96xbf16, #tpu.memory_space<vmem>>, %arg6: memref<1x96xf32, #tpu.memory_space<vmem>>, %arg7: memref<32x32xbf16, #tpu.memory_space<vmem>>, %arg8: memref<1x32xf32, #tpu.memory_space<vmem>>, %arg9: memref<1x32xf32, #tpu.memory_space<vmem>>, %arg10: memref<1x32xf32, #tpu.memory_space<vmem>>, %arg11: memref<32x128xbf16, #tpu.memory_space<vmem>>, %arg12: memref<1x128xf32, #tpu.memory_space<vmem>>, %arg13: memref<128x32xbf16, #tpu.memory_space<vmem>>, %arg14: memref<1x32xf32, #tpu.memory_space<vmem>>, %arg15: memref<2x8x32xbf16, #tpu.memory_space<vmem>>) attributes {dimension_semantics = [#tpu.dimension_semantics<parallel>], iteration_bounds = array<i64: 1>, scalar_prefetch = 0 : i64, scratch_operands = 0 : i64, tpu.core_type = #tpu.core_type<tc>, window_params = [{transform_indices = @transform_0, window_bounds = array<i64: 2, 8, 32>}, {pipeline_mode = #tpu.pipeline_mode<synchronous>, transform_indices = @transform_1, window_bounds = array<i64: 8, 8>}, {pipeline_mode = #tpu.pipeline_mode<synchronous>, transform_indices = @transform_2, window_bounds = array<i64: 1, 32>}, {pipeline_mode = #tpu.pipeline_mode<synchronous>, transform_indices = @transform_3, window_bounds = array<i64: 1, 32>}, {pipeline_mode = #tpu.pipeline_mode<synchronous>, transform_indices = @transform_4, window_bounds = array<i64: 32, 96>}, {pipeline_mode = #tpu.pipeline_mode<synchronous>, transform_indices = @transform_5, window_bounds = array<i64: 1, 96>}, {pipeline_mode = #tpu.pipeline_mode<synchronous>, transform_indices = @transform_6, window_bounds = array<i64: 32, 32>}, {pipeline_mode = #tpu.pipeline_mode<synchronous>, transform_indices = @transform_7, window_bounds = array<i64: 1, 32>}, {pipeline_mode = #tpu.pipeline_mode<synchronous>, transform_indices = @transform_8, window_bounds = array<i64: 1, 32>}, {pipeline_mode = #tpu.pipeline_mode<synchronous>, transform_indices = @transform_9, window_bounds = array<i64: 1, 32>}, {pipeline_mode = #tpu.pipeline_mode<synchronous>, transform_indices = @transform_10, window_bounds = array<i64: 32, 128>}, {pipeline_mode = #tpu.pipeline_mode<synchronous>, transform_indices = @transform_11, window_bounds = array<i64: 1, 128>}, {pipeline_mode = #tpu.pipeline_mode<synchronous>, transform_indices = @transform_12, window_bounds = array<i64: 128, 32>}, {pipeline_mode = #tpu.pipeline_mode<synchronous>, transform_indices = @transform_13, window_bounds = array<i64: 1, 32>}, {transform_indices = @transform_14, window_bounds = array<i64: 2, 8, 32>}]} {
    %c0 = arith.constant 0 : index
    %c0_0 = arith.constant 0 : index
    %c0_1 = arith.constant 0 : index
    %0 = vector.load %arg1[%c0, %c0_0, %c0_1] : memref<2x8x32xbf16, #tpu.memory_space<vmem>>, vector<2x8x32xbf16>
    %1 = arith.extf %0 : vector<2x8x32xbf16> to vector<2x8x32xf32>
    %2 = vector.shape_cast %1 : vector<2x8x32xf32> to vector<16x32xf32>
    %c0_2 = arith.constant 0 : index
    %c0_3 = arith.constant 0 : index
    %3 = vector.load %arg2[%c0_2, %c0_3] : memref<8x8xf32, #tpu.memory_space<vmem>>, vector<8x8xf32>
    %c0_4 = arith.constant 0 : index
    %c0_5 = arith.constant 0 : index
    %4 = vector.load %arg3[%c0_4, %c0_5] : memref<1x32xf32, #tpu.memory_space<vmem>>, vector<1x32xf32>
    %c0_6 = arith.constant 0 : index
    %c0_7 = arith.constant 0 : index
    %5 = vector.load %arg4[%c0_6, %c0_7] : memref<1x32xf32, #tpu.memory_space<vmem>>, vector<1x32xf32>
    %cst = arith.constant dense<0.000000e+00> : vector<16xf32>
    %6 = vector.multi_reduction <add>, %2, %cst [1] : vector<16x32xf32> to vector<16xf32>
    %7 = vector.shape_cast %6 : vector<16xf32> to vector<16x1xf32>
    %cst_8 = arith.constant 3.200000e+01 : f32
    %8 = vector.broadcast %cst_8 : f32 to vector<16x1xf32>
    %9 = arith.divf %7, %8 : vector<16x1xf32>
    %10 = vector.broadcast %9 : vector<16x1xf32> to vector<16x32xf32>
    %11 = arith.subf %2, %10 : vector<16x32xf32>
    %12 = arith.mulf %11, %11 : vector<16x32xf32>
    %cst_9 = arith.constant dense<0.000000e+00> : vector<16xf32>
    %13 = vector.multi_reduction <add>, %12, %cst_9 [1] : vector<16x32xf32> to vector<16xf32>
    %14 = vector.shape_cast %13 : vector<16xf32> to vector<16x1xf32>
    %cst_10 = arith.constant 3.200000e+01 : f32
    %15 = vector.broadcast %cst_10 : f32 to vector<16x1xf32>
    %16 = arith.divf %14, %15 : vector<16x1xf32>
    %17 = vector.broadcast %9 : vector<16x1xf32> to vector<16x32xf32>
    %18 = arith.subf %2, %17 : vector<16x32xf32>
    %cst_11 = arith.constant 9.99999974E-6 : f32
    %19 = vector.broadcast %cst_11 : f32 to vector<16x1xf32>
    %20 = arith.addf %16, %19 : vector<16x1xf32>
    %21 = math.rsqrt %20 : vector<16x1xf32>
    %22 = vector.broadcast %21 : vector<16x1xf32> to vector<16x32xf32>
    %23 = arith.mulf %18, %22 : vector<16x32xf32>
    %24 = vector.broadcast %4 : vector<1x32xf32> to vector<16x32xf32>
    %25 = arith.mulf %23, %24 : vector<16x32xf32>
    %26 = vector.broadcast %5 : vector<1x32xf32> to vector<16x32xf32>
    %27 = arith.addf %25, %26 : vector<16x32xf32>
    %28 = arith.truncf %27 : vector<16x32xf32> to vector<16x32xbf16>
    %c0_12 = arith.constant 0 : index
    %c0_13 = arith.constant 0 : index
    %29 = vector.load %arg5[%c0_12, %c0_13] : memref<32x96xbf16, #tpu.memory_space<vmem>>, vector<32x96xbf16>
    %cst_14 = arith.constant dense<0.000000e+00> : vector<16x96xf32>
    %30 = tpu.matmul %28, %29, %cst_14 {dimension_numbers = #tpu.dot_dimension_numbers<[1], [0], [0], [1], [0, 0, 1, 1], [], []>} : vector<16x32xbf16>, vector<32x96xbf16>, vector<16x96xf32> -> vector<16x96xf32>
    %c0_15 = arith.constant 0 : index
    %c0_16 = arith.constant 0 : index
    %31 = vector.load %arg6[%c0_15, %c0_16] : memref<1x96xf32, #tpu.memory_space<vmem>>, vector<1x96xf32>
    %32 = vector.broadcast %31 : vector<1x96xf32> to vector<16x96xf32>
    %33 = arith.addf %30, %32 : vector<16x96xf32>
    %34 = arith.truncf %33 : vector<16x96xf32> to vector<16x96xbf16>
    %c0_17 = arith.constant 0 : index
    %c0_18 = arith.constant 0 : index
    %35 = vector.load %arg7[%c0_17, %c0_18] : memref<32x32xbf16, #tpu.memory_space<vmem>>, vector<32x32xbf16>
    %cst_19 = arith.constant 0.000000e+00 : f32
    %36 = vector.broadcast %cst_19 : f32 to vector<16x32xf32>
    %37 = vector.extract_strided_slice %34 {offsets = [0, 0], sizes = [16, 8], strides = [1, 1]} : vector<16x96xbf16> to vector<16x8xbf16>
    %38 = vector.shape_cast %37 : vector<16x8xbf16> to vector<2x8x8xbf16>
    %39 = vector.extract_strided_slice %34 {offsets = [0, 32], sizes = [16, 8], strides = [1, 1]} : vector<16x96xbf16> to vector<16x8xbf16>
    %40 = vector.shape_cast %39 : vector<16x8xbf16> to vector<2x8x8xbf16>
    %41 = vector.extract_strided_slice %34 {offsets = [0, 64], sizes = [16, 8], strides = [1, 1]} : vector<16x96xbf16> to vector<16x8xbf16>
    %42 = vector.shape_cast %41 : vector<16x8xbf16> to vector<2x8x8xbf16>
    "tpu.trace_start"() <{level = 10 : i32, message = "bqd,bkd->bqk"}> : () -> ()
    %cst_20 = arith.constant dense<0.000000e+00> : vector<2x8x8xf32>
    %43 = tpu.matmul %38, %40, %cst_20 {dimension_numbers = #tpu.dot_dimension_numbers<[2], [2], [1], [1], [0, 0, 0, 1, 1, 1], [0], [0]>} : vector<2x8x8xbf16>, vector<2x8x8xbf16>, vector<2x8x8xf32> -> vector<2x8x8xf32>
    "tpu.trace_stop"() : () -> ()
    %44 = vector.shape_cast %3 : vector<8x8xf32> to vector<1x8x8xf32>
    %45 = vector.broadcast %44 : vector<1x8x8xf32> to vector<2x8x8xf32>
    %46 = arith.addf %43, %45 : vector<2x8x8xf32>
    %cst_21 = arith.constant dense<0xFF800000> : vector<2x8xf32>
    %47 = vector.multi_reduction <maximumf>, %46, %cst_21 [2] : vector<2x8x8xf32> to vector<2x8xf32>
    %48 = vector.shape_cast %47 : vector<2x8xf32> to vector<2x8x1xf32>
    %49 = vector.broadcast %48 : vector<2x8x1xf32> to vector<2x8x8xf32>
    %50 = arith.subf %46, %49 : vector<2x8x8xf32>
    %51 = math.exp %50 : vector<2x8x8xf32>
    %cst_22 = arith.constant dense<0.000000e+00> : vector<2x8xf32>
    %52 = vector.multi_reduction <add>, %51, %cst_22 [2] : vector<2x8x8xf32> to vector<2x8xf32>
    %53 = vector.shape_cast %52 : vector<2x8xf32> to vector<2x8x1xf32>
    %54 = tpu.reciprocal %53 {approx = true} : vector<2x8x1xf32> -> vector<2x8x1xf32>
    %55 = vector.broadcast %54 : vector<2x8x1xf32> to vector<2x8x8xf32>
    %56 = arith.mulf %51, %55 : vector<2x8x8xf32>
    %57 = arith.truncf %56 : vector<2x8x8xf32> to vector<2x8x8xbf16>
    "tpu.trace_start"() <{level = 10 : i32, message = "bqk,bkd->bqd"}> : () -> ()
    %cst_23 = arith.constant dense<0.000000e+00> : vector<2x8x8xf32>
    %58 = tpu.matmul %57, %42, %cst_23 {dimension_numbers = #tpu.dot_dimension_numbers<[2], [1], [1], [2], [0, 0, 0, 1, 1, 2], [0], [0]>} : vector<2x8x8xbf16>, vector<2x8x8xbf16>, vector<2x8x8xf32> -> vector<2x8x8xf32>
    "tpu.trace_stop"() : () -> ()
    %59 = vector.shape_cast %58 : vector<2x8x8xf32> to vector<16x8xf32>
    %60 = arith.truncf %59 : vector<16x8xf32> to vector<16x8xbf16>
    %61 = vector.extract_strided_slice %35 {offsets = [0, 0], sizes = [8, 32], strides = [1, 1]} : vector<32x32xbf16> to vector<8x32xbf16>
    %cst_24 = arith.constant dense<0.000000e+00> : vector<16x32xf32>
    %62 = tpu.matmul %60, %61, %cst_24 {dimension_numbers = #tpu.dot_dimension_numbers<[1], [0], [0], [1], [0, 0, 1, 1], [], []>} : vector<16x8xbf16>, vector<8x32xbf16>, vector<16x32xf32> -> vector<16x32xf32>
    %63 = arith.addf %36, %62 : vector<16x32xf32>
    %64 = vector.extract_strided_slice %34 {offsets = [0, 8], sizes = [16, 8], strides = [1, 1]} : vector<16x96xbf16> to vector<16x8xbf16>
    %65 = vector.shape_cast %64 : vector<16x8xbf16> to vector<2x8x8xbf16>
    %66 = vector.extract_strided_slice %34 {offsets = [0, 40], sizes = [16, 8], strides = [1, 1]} : vector<16x96xbf16> to vector<16x8xbf16>
    %67 = vector.shape_cast %66 : vector<16x8xbf16> to vector<2x8x8xbf16>
    %68 = vector.extract_strided_slice %34 {offsets = [0, 72], sizes = [16, 8], strides = [1, 1]} : vector<16x96xbf16> to vector<16x8xbf16>
    %69 = vector.shape_cast %68 : vector<16x8xbf16> to vector<2x8x8xbf16>
    "tpu.trace_start"() <{level = 10 : i32, message = "bqd,bkd->bqk"}> : () -> ()
    %cst_25 = arith.constant dense<0.000000e+00> : vector<2x8x8xf32>
    %70 = tpu.matmul %65, %67, %cst_25 {dimension_numbers = #tpu.dot_dimension_numbers<[2], [2], [1], [1], [0, 0, 0, 1, 1, 1], [0], [0]>} : vector<2x8x8xbf16>, vector<2x8x8xbf16>, vector<2x8x8xf32> -> vector<2x8x8xf32>
    "tpu.trace_stop"() : () -> ()
    %71 = vector.shape_cast %3 : vector<8x8xf32> to vector<1x8x8xf32>
    %72 = vector.broadcast %71 : vector<1x8x8xf32> to vector<2x8x8xf32>
    %73 = arith.addf %70, %72 : vector<2x8x8xf32>
    %cst_26 = arith.constant dense<0xFF800000> : vector<2x8xf32>
    %74 = vector.multi_reduction <maximumf>, %73, %cst_26 [2] : vector<2x8x8xf32> to vector<2x8xf32>
    %75 = vector.shape_cast %74 : vector<2x8xf32> to vector<2x8x1xf32>
    %76 = vector.broadcast %75 : vector<2x8x1xf32> to vector<2x8x8xf32>
    %77 = arith.subf %73, %76 : vector<2x8x8xf32>
    %78 = math.exp %77 : vector<2x8x8xf32>
    %cst_27 = arith.constant dense<0.000000e+00> : vector<2x8xf32>
    %79 = vector.multi_reduction <add>, %78, %cst_27 [2] : vector<2x8x8xf32> to vector<2x8xf32>
    %80 = vector.shape_cast %79 : vector<2x8xf32> to vector<2x8x1xf32>
    %81 = tpu.reciprocal %80 {approx = true} : vector<2x8x1xf32> -> vector<2x8x1xf32>
    %82 = vector.broadcast %81 : vector<2x8x1xf32> to vector<2x8x8xf32>
    %83 = arith.mulf %78, %82 : vector<2x8x8xf32>
    %84 = arith.truncf %83 : vector<2x8x8xf32> to vector<2x8x8xbf16>
    "tpu.trace_start"() <{level = 10 : i32, message = "bqk,bkd->bqd"}> : () -> ()
    %cst_28 = arith.constant dense<0.000000e+00> : vector<2x8x8xf32>
    %85 = tpu.matmul %84, %69, %cst_28 {dimension_numbers = #tpu.dot_dimension_numbers<[2], [1], [1], [2], [0, 0, 0, 1, 1, 2], [0], [0]>} : vector<2x8x8xbf16>, vector<2x8x8xbf16>, vector<2x8x8xf32> -> vector<2x8x8xf32>
    "tpu.trace_stop"() : () -> ()
    %86 = vector.shape_cast %85 : vector<2x8x8xf32> to vector<16x8xf32>
    %87 = arith.truncf %86 : vector<16x8xf32> to vector<16x8xbf16>
    %88 = vector.extract_strided_slice %35 {offsets = [8, 0], sizes = [8, 32], strides = [1, 1]} : vector<32x32xbf16> to vector<8x32xbf16>
    %cst_29 = arith.constant dense<0.000000e+00> : vector<16x32xf32>
    %89 = tpu.matmul %87, %88, %cst_29 {dimension_numbers = #tpu.dot_dimension_numbers<[1], [0], [0], [1], [0, 0, 1, 1], [], []>} : vector<16x8xbf16>, vector<8x32xbf16>, vector<16x32xf32> -> vector<16x32xf32>
    %90 = arith.addf %63, %89 : vector<16x32xf32>
    %91 = vector.extract_strided_slice %34 {offsets = [0, 16], sizes = [16, 8], strides = [1, 1]} : vector<16x96xbf16> to vector<16x8xbf16>
    %92 = vector.shape_cast %91 : vector<16x8xbf16> to vector<2x8x8xbf16>
    %93 = vector.extract_strided_slice %34 {offsets = [0, 48], sizes = [16, 8], strides = [1, 1]} : vector<16x96xbf16> to vector<16x8xbf16>
    %94 = vector.shape_cast %93 : vector<16x8xbf16> to vector<2x8x8xbf16>
    %95 = vector.extract_strided_slice %34 {offsets = [0, 80], sizes = [16, 8], strides = [1, 1]} : vector<16x96xbf16> to vector<16x8xbf16>
    %96 = vector.shape_cast %95 : vector<16x8xbf16> to vector<2x8x8xbf16>
    "tpu.trace_start"() <{level = 10 : i32, message = "bqd,bkd->bqk"}> : () -> ()
    %cst_30 = arith.constant dense<0.000000e+00> : vector<2x8x8xf32>
    %97 = tpu.matmul %92, %94, %cst_30 {dimension_numbers = #tpu.dot_dimension_numbers<[2], [2], [1], [1], [0, 0, 0, 1, 1, 1], [0], [0]>} : vector<2x8x8xbf16>, vector<2x8x8xbf16>, vector<2x8x8xf32> -> vector<2x8x8xf32>
    "tpu.trace_stop"() : () -> ()
    %98 = vector.shape_cast %3 : vector<8x8xf32> to vector<1x8x8xf32>
    %99 = vector.broadcast %98 : vector<1x8x8xf32> to vector<2x8x8xf32>
    %100 = arith.addf %97, %99 : vector<2x8x8xf32>
    %cst_31 = arith.constant dense<0xFF800000> : vector<2x8xf32>
    %101 = vector.multi_reduction <maximumf>, %100, %cst_31 [2] : vector<2x8x8xf32> to vector<2x8xf32>
    %102 = vector.shape_cast %101 : vector<2x8xf32> to vector<2x8x1xf32>
    %103 = vector.broadcast %102 : vector<2x8x1xf32> to vector<2x8x8xf32>
    %104 = arith.subf %100, %103 : vector<2x8x8xf32>
    %105 = math.exp %104 : vector<2x8x8xf32>
    %cst_32 = arith.constant dense<0.000000e+00> : vector<2x8xf32>
    %106 = vector.multi_reduction <add>, %105, %cst_32 [2] : vector<2x8x8xf32> to vector<2x8xf32>
    %107 = vector.shape_cast %106 : vector<2x8xf32> to vector<2x8x1xf32>
    %108 = tpu.reciprocal %107 {approx = true} : vector<2x8x1xf32> -> vector<2x8x1xf32>
    %109 = vector.broadcast %108 : vector<2x8x1xf32> to vector<2x8x8xf32>
    %110 = arith.mulf %105, %109 : vector<2x8x8xf32>
    %111 = arith.truncf %110 : vector<2x8x8xf32> to vector<2x8x8xbf16>
    "tpu.trace_start"() <{level = 10 : i32, message = "bqk,bkd->bqd"}> : () -> ()
    %cst_33 = arith.constant dense<0.000000e+00> : vector<2x8x8xf32>
    %112 = tpu.matmul %111, %96, %cst_33 {dimension_numbers = #tpu.dot_dimension_numbers<[2], [1], [1], [2], [0, 0, 0, 1, 1, 2], [0], [0]>} : vector<2x8x8xbf16>, vector<2x8x8xbf16>, vector<2x8x8xf32> -> vector<2x8x8xf32>
    "tpu.trace_stop"() : () -> ()
    %113 = vector.shape_cast %112 : vector<2x8x8xf32> to vector<16x8xf32>
    %114 = arith.truncf %113 : vector<16x8xf32> to vector<16x8xbf16>
    %115 = vector.extract_strided_slice %35 {offsets = [16, 0], sizes = [8, 32], strides = [1, 1]} : vector<32x32xbf16> to vector<8x32xbf16>
    %cst_34 = arith.constant dense<0.000000e+00> : vector<16x32xf32>
    %116 = tpu.matmul %114, %115, %cst_34 {dimension_numbers = #tpu.dot_dimension_numbers<[1], [0], [0], [1], [0, 0, 1, 1], [], []>} : vector<16x8xbf16>, vector<8x32xbf16>, vector<16x32xf32> -> vector<16x32xf32>
    %117 = arith.addf %90, %116 : vector<16x32xf32>
    %118 = vector.extract_strided_slice %34 {offsets = [0, 24], sizes = [16, 8], strides = [1, 1]} : vector<16x96xbf16> to vector<16x8xbf16>
    %119 = vector.shape_cast %118 : vector<16x8xbf16> to vector<2x8x8xbf16>
    %120 = vector.extract_strided_slice %34 {offsets = [0, 56], sizes = [16, 8], strides = [1, 1]} : vector<16x96xbf16> to vector<16x8xbf16>
    %121 = vector.shape_cast %120 : vector<16x8xbf16> to vector<2x8x8xbf16>
    %122 = vector.extract_strided_slice %34 {offsets = [0, 88], sizes = [16, 8], strides = [1, 1]} : vector<16x96xbf16> to vector<16x8xbf16>
    %123 = vector.shape_cast %122 : vector<16x8xbf16> to vector<2x8x8xbf16>
    "tpu.trace_start"() <{level = 10 : i32, message = "bqd,bkd->bqk"}> : () -> ()
    %cst_35 = arith.constant dense<0.000000e+00> : vector<2x8x8xf32>
    %124 = tpu.matmul %119, %121, %cst_35 {dimension_numbers = #tpu.dot_dimension_numbers<[2], [2], [1], [1], [0, 0, 0, 1, 1, 1], [0], [0]>} : vector<2x8x8xbf16>, vector<2x8x8xbf16>, vector<2x8x8xf32> -> vector<2x8x8xf32>
    "tpu.trace_stop"() : () -> ()
    %125 = vector.shape_cast %3 : vector<8x8xf32> to vector<1x8x8xf32>
    %126 = vector.broadcast %125 : vector<1x8x8xf32> to vector<2x8x8xf32>
    %127 = arith.addf %124, %126 : vector<2x8x8xf32>
    %cst_36 = arith.constant dense<0xFF800000> : vector<2x8xf32>
    %128 = vector.multi_reduction <maximumf>, %127, %cst_36 [2] : vector<2x8x8xf32> to vector<2x8xf32>
    %129 = vector.shape_cast %128 : vector<2x8xf32> to vector<2x8x1xf32>
    %130 = vector.broadcast %129 : vector<2x8x1xf32> to vector<2x8x8xf32>
    %131 = arith.subf %127, %130 : vector<2x8x8xf32>
    %132 = math.exp %131 : vector<2x8x8xf32>
    %cst_37 = arith.constant dense<0.000000e+00> : vector<2x8xf32>
    %133 = vector.multi_reduction <add>, %132, %cst_37 [2] : vector<2x8x8xf32> to vector<2x8xf32>
    %134 = vector.shape_cast %133 : vector<2x8xf32> to vector<2x8x1xf32>
    %135 = tpu.reciprocal %134 {approx = true} : vector<2x8x1xf32> -> vector<2x8x1xf32>
    %136 = vector.broadcast %135 : vector<2x8x1xf32> to vector<2x8x8xf32>
    %137 = arith.mulf %132, %136 : vector<2x8x8xf32>
    %138 = arith.truncf %137 : vector<2x8x8xf32> to vector<2x8x8xbf16>
    "tpu.trace_start"() <{level = 10 : i32, message = "bqk,bkd->bqd"}> : () -> ()
    %cst_38 = arith.constant dense<0.000000e+00> : vector<2x8x8xf32>
    %139 = tpu.matmul %138, %123, %cst_38 {dimension_numbers = #tpu.dot_dimension_numbers<[2], [1], [1], [2], [0, 0, 0, 1, 1, 2], [0], [0]>} : vector<2x8x8xbf16>, vector<2x8x8xbf16>, vector<2x8x8xf32> -> vector<2x8x8xf32>
    "tpu.trace_stop"() : () -> ()
    %140 = vector.shape_cast %139 : vector<2x8x8xf32> to vector<16x8xf32>
    %141 = arith.truncf %140 : vector<16x8xf32> to vector<16x8xbf16>
    %142 = vector.extract_strided_slice %35 {offsets = [24, 0], sizes = [8, 32], strides = [1, 1]} : vector<32x32xbf16> to vector<8x32xbf16>
    %cst_39 = arith.constant dense<0.000000e+00> : vector<16x32xf32>
    %143 = tpu.matmul %141, %142, %cst_39 {dimension_numbers = #tpu.dot_dimension_numbers<[1], [0], [0], [1], [0, 0, 1, 1], [], []>} : vector<16x8xbf16>, vector<8x32xbf16>, vector<16x32xf32> -> vector<16x32xf32>
    %144 = arith.addf %117, %143 : vector<16x32xf32>
    %145 = arith.addf %2, %144 : vector<16x32xf32>
    %c0_40 = arith.constant 0 : index
    %c0_41 = arith.constant 0 : index
    %146 = vector.load %arg8[%c0_40, %c0_41] : memref<1x32xf32, #tpu.memory_space<vmem>>, vector<1x32xf32>
    %147 = vector.broadcast %146 : vector<1x32xf32> to vector<16x32xf32>
    %148 = arith.addf %145, %147 : vector<16x32xf32>
    %c0_42 = arith.constant 0 : index
    %c0_43 = arith.constant 0 : index
    %149 = vector.load %arg9[%c0_42, %c0_43] : memref<1x32xf32, #tpu.memory_space<vmem>>, vector<1x32xf32>
    %c0_44 = arith.constant 0 : index
    %c0_45 = arith.constant 0 : index
    %150 = vector.load %arg10[%c0_44, %c0_45] : memref<1x32xf32, #tpu.memory_space<vmem>>, vector<1x32xf32>
    %cst_46 = arith.constant dense<0.000000e+00> : vector<16xf32>
    %151 = vector.multi_reduction <add>, %148, %cst_46 [1] : vector<16x32xf32> to vector<16xf32>
    %152 = vector.shape_cast %151 : vector<16xf32> to vector<16x1xf32>
    %cst_47 = arith.constant 3.200000e+01 : f32
    %153 = vector.broadcast %cst_47 : f32 to vector<16x1xf32>
    %154 = arith.divf %152, %153 : vector<16x1xf32>
    %155 = vector.broadcast %154 : vector<16x1xf32> to vector<16x32xf32>
    %156 = arith.subf %148, %155 : vector<16x32xf32>
    %157 = arith.mulf %156, %156 : vector<16x32xf32>
    %cst_48 = arith.constant dense<0.000000e+00> : vector<16xf32>
    %158 = vector.multi_reduction <add>, %157, %cst_48 [1] : vector<16x32xf32> to vector<16xf32>
    %159 = vector.shape_cast %158 : vector<16xf32> to vector<16x1xf32>
    %cst_49 = arith.constant 3.200000e+01 : f32
    %160 = vector.broadcast %cst_49 : f32 to vector<16x1xf32>
    %161 = arith.divf %159, %160 : vector<16x1xf32>
    %162 = vector.broadcast %154 : vector<16x1xf32> to vector<16x32xf32>
    %163 = arith.subf %148, %162 : vector<16x32xf32>
    %cst_50 = arith.constant 9.99999974E-6 : f32
    %164 = vector.broadcast %cst_50 : f32 to vector<16x1xf32>
    %165 = arith.addf %161, %164 : vector<16x1xf32>
    %166 = math.rsqrt %165 : vector<16x1xf32>
    %167 = vector.broadcast %166 : vector<16x1xf32> to vector<16x32xf32>
    %168 = arith.mulf %163, %167 : vector<16x32xf32>
    %169 = vector.broadcast %149 : vector<1x32xf32> to vector<16x32xf32>
    %170 = arith.mulf %168, %169 : vector<16x32xf32>
    %171 = vector.broadcast %150 : vector<1x32xf32> to vector<16x32xf32>
    %172 = arith.addf %170, %171 : vector<16x32xf32>
    %173 = arith.truncf %172 : vector<16x32xf32> to vector<16x32xbf16>
    %c0_51 = arith.constant 0 : index
    %c0_52 = arith.constant 0 : index
    %174 = vector.load %arg11[%c0_51, %c0_52] : memref<32x128xbf16, #tpu.memory_space<vmem>>, vector<32x128xbf16>
    %cst_53 = arith.constant dense<0.000000e+00> : vector<16x128xf32>
    %175 = tpu.matmul %173, %174, %cst_53 {dimension_numbers = #tpu.dot_dimension_numbers<[1], [0], [0], [1], [0, 0, 1, 1], [], []>} : vector<16x32xbf16>, vector<32x128xbf16>, vector<16x128xf32> -> vector<16x128xf32>
    %c0_54 = arith.constant 0 : index
    %c0_55 = arith.constant 0 : index
    %176 = vector.load %arg12[%c0_54, %c0_55] : memref<1x128xf32, #tpu.memory_space<vmem>>, vector<1x128xf32>
    %177 = vector.broadcast %176 : vector<1x128xf32> to vector<16x128xf32>
    %178 = arith.addf %175, %177 : vector<16x128xf32>
    %cst_56 = arith.constant 5.000000e-01 : f32
    %179 = vector.broadcast %cst_56 : f32 to vector<16x128xf32>
    %180 = arith.mulf %179, %178 : vector<16x128xf32>
    %cst_57 = arith.constant 0.707106769 : f32
    %181 = vector.broadcast %cst_57 : f32 to vector<16x128xf32>
    %182 = arith.mulf %178, %181 : vector<16x128xf32>
    %183 = math.erf %182 : vector<16x128xf32>
    %cst_58 = arith.constant 1.000000e+00 : f32
    %184 = vector.broadcast %cst_58 : f32 to vector<16x128xf32>
    %185 = arith.addf %184, %183 : vector<16x128xf32>
    %186 = arith.mulf %180, %185 : vector<16x128xf32>
    %187 = arith.truncf %186 : vector<16x128xf32> to vector<16x128xbf16>
    %c0_59 = arith.constant 0 : index
    %c0_60 = arith.constant 0 : index
    %188 = vector.load %arg13[%c0_59, %c0_60] : memref<128x32xbf16, #tpu.memory_space<vmem>>, vector<128x32xbf16>
    %cst_61 = arith.constant dense<0.000000e+00> : vector<16x32xf32>
    %189 = tpu.matmul %187, %188, %cst_61 {dimension_numbers = #tpu.dot_dimension_numbers<[1], [0], [0], [1], [0, 0, 1, 1], [], []>} : vector<16x128xbf16>, vector<128x32xbf16>, vector<16x32xf32> -> vector<16x32xf32>
    %c0_62 = arith.constant 0 : index
    %c0_63 = arith.constant 0 : index
    %190 = vector.load %arg14[%c0_62, %c0_63] : memref<1x32xf32, #tpu.memory_space<vmem>>, vector<1x32xf32>
    %191 = vector.broadcast %190 : vector<1x32xf32> to vector<16x32xf32>
    %192 = arith.addf %189, %191 : vector<16x32xf32>
    %193 = arith.addf %148, %192 : vector<16x32xf32>
    %194 = vector.shape_cast %193 : vector<16x32xf32> to vector<2x8x32xf32>
    %195 = arith.truncf %194 : vector<2x8x32xf32> to vector<2x8x32xbf16>
    %c0_64 = arith.constant 0 : index
    %c0_65 = arith.constant 0 : index
    %c0_66 = arith.constant 0 : index
    %196 = vector.load %arg15[%c0_64, %c0_65, %c0_66] : memref<2x8x32xbf16, #tpu.memory_space<vmem>>, vector<2x8x32xbf16>
    tpu.vector_store %arg15[%c0_64, %c0_65, %c0_66], %195 {strides = array<i32>} : memref<2x8x32xbf16, #tpu.memory_space<vmem>>, vector<2x8x32xbf16>,
    return
  }
  func.func @transform_0(%arg0: i32) -> (i32, i32, i32) {
    %c0_i32 = arith.constant 0 : i32
    %c0_i32_0 = arith.constant 0 : i32
    %c0_i32_1 = arith.constant 0 : i32
    return %arg0, %c0_i32, %c0_i32_0 : i32, i32, i32
  }
  func.func @transform_1(%arg0: i32) -> (i32, i32) {
    %c0_i32 = arith.constant 0 : i32
    %c0_i32_0 = arith.constant 0 : i32
    %c0_i32_1 = arith.constant 0 : i32
    return %c0_i32, %c0_i32_0 : i32, i32
  }
  func.func @transform_2(%arg0: i32) -> (i32, i32) {
    %c0_i32 = arith.constant 0 : i32
    %c0_i32_0 = arith.constant 0 : i32
    %c0_i32_1 = arith.constant 0 : i32
    return %c0_i32, %c0_i32_0 : i32, i32
  }
  func.func @transform_3(%arg0: i32) -> (i32, i32) {
    %c0_i32 = arith.constant 0 : i32
    %c0_i32_0 = arith.constant 0 : i32
    %c0_i32_1 = arith.constant 0 : i32
    return %c0_i32, %c0_i32_0 : i32, i32
  }
  func.func @transform_4(%arg0: i32) -> (i32, i32) {
    %c0_i32 = arith.constant 0 : i32
    %c0_i32_0 = arith.constant 0 : i32
    %c0_i32_1 = arith.constant 0 : i32
    return %c0_i32, %c0_i32_0 : i32, i32
  }
  func.func @transform_5(%arg0: i32) -> (i32, i32) {
    %c0_i32 = arith.constant 0 : i32
    %c0_i32_0 = arith.constant 0 : i32
    %c0_i32_1 = arith.constant 0 : i32
    return %c0_i32, %c0_i32_0 : i32, i32
  }
  func.func @transform_6(%arg0: i32) -> (i32, i32) {
    %c0_i32 = arith.constant 0 : i32
    %c0_i32_0 = arith.constant 0 : i32
    %c0_i32_1 = arith.constant 0 : i32
    return %c0_i32, %c0_i32_0 : i32, i32
  }
  func.func @transform_7(%arg0: i32) -> (i32, i32) {
    %c0_i32 = arith.constant 0 : i32
    %c0_i32_0 = arith.constant 0 : i32
    %c0_i32_1 = arith.constant 0 : i32
    return %c0_i32, %c0_i32_0 : i32, i32
  }
  func.func @transform_8(%arg0: i32) -> (i32, i32) {
    %c0_i32 = arith.constant 0 : i32
    %c0_i32_0 = arith.constant 0 : i32
    %c0_i32_1 = arith.constant 0 : i32
    return %c0_i32, %c0_i32_0 : i32, i32
  }
  func.func @transform_9(%arg0: i32) -> (i32, i32) {
    %c0_i32 = arith.constant 0 : i32
    %c0_i32_0 = arith.constant 0 : i32
    %c0_i32_1 = arith.constant 0 : i32
    return %c0_i32, %c0_i32_0 : i32, i32
  }
  func.func @transform_10(%arg0: i32) -> (i32, i32) {
    %c0_i32 = arith.constant 0 : i32
    %c0_i32_0 = arith.constant 0 : i32
    %c0_i32_1 = arith.constant 0 : i32
    return %c0_i32, %c0_i32_0 : i32, i32
  }
  func.func @transform_11(%arg0: i32) -> (i32, i32) {
    %c0_i32 = arith.constant 0 : i32
    %c0_i32_0 = arith.constant 0 : i32
    %c0_i32_1 = arith.constant 0 : i32
    return %c0_i32, %c0_i32_0 : i32, i32
  }
  func.func @transform_12(%arg0: i32) -> (i32, i32) {
    %c0_i32 = arith.constant 0 : i32
    %c0_i32_0 = arith.constant 0 : i32
    %c0_i32_1 = arith.constant 0 : i32
    return %c0_i32, %c0_i32_0 : i32, i32
  }
  func.func @transform_13(%arg0: i32) -> (i32, i32) {
    %c0_i32 = arith.constant 0 : i32
    %c0_i32_0 = arith.constant 0 : i32
    %c0_i32_1 = arith.constant 0 : i32
    return %c0_i32, %c0_i32_0 : i32, i32
  }
  func.func @transform_14(%arg0: i32) -> (i32, i32, i32) {
    %c0_i32 = arith.constant 0 : i32
    %c0_i32_0 = arith.constant 0 : i32
    %c0_i32_1 = arith.constant 0 : i32
    return %arg0, %c0_i32, %c0_i32_0 : i32, i32, i32
  }
}

</mosaic_0001>

<bundles_post_ra>
// kernel: tpu_custom_call.1
= control target key start
LH: loop header
LB: loop body
LE: loop exit
PB: predicated region body
PF: predicated region fallthrough
CT: control target
= control target key end

     0   :  { %vm56_vm0 = vcmask 261120   ;;  %s1518_s0 = inlined_call_operand.vmem [shape: bf16[2,8,32], index: 0, kind: input, shape index: {}]   ;;  %s1519_s1 = inlined_call_operand.vmem [shape: f32[8,8], index: 1, kind: input, shape index: {}]   ;;  %s1520_s2 = inlined_call_operand.vmem [shape: f32[1,32], index: 2, kind: input, shape index: {}]   ;;  %s1521_s3 = inlined_call_operand.vmem [shape: f32[1,32], index: 3, kind: input, shape index: {}]   ;;  %s1522_s4 = inlined_call_operand.vmem [shape: bf16[32,96], index: 4, kind: input, shape index: {}]   ;;  %s1523_s5 = inlined_call_operand.vmem [shape: f32[1,96], index: 5, kind: input, shape index: {}]   ;;  %s1524_s6 = inlined_call_operand.vmem [shape: bf16[32,32], index: 6, kind: input, shape index: {}]   ;;  %s1525_s7 = inlined_call_operand.vmem [shape: f32[1,32], index: 7, kind: input, shape index: {}]   ;;  %s1526_s8 = inlined_call_operand.vmem [shape: f32[1,32], index: 8, kind: input, shape index: {}]   ;;  %s1527_s9 = inlined_call_operand.vmem [shape: f32[1,32], index: 9, kind: input, shape index: {}]   ;;  %s1528_s10 = inlined_call_operand.vmem [shape: bf16[32,128], index: 10, kind: input, shape index: {}]   ;;  %s1529_s11 = inlined_call_operand.vmem [shape: f32[1,128], index: 11, kind: input, shape index: {}]   ;;  %s1530_s12 = inlined_call_operand.vmem [shape: bf16[128,32], index: 12, kind: input, shape index: {}]   ;;  %s1531_s13 = inlined_call_operand.vmem [shape: f32[1,32], index: 13, kind: input, shape index: {}]   ;;  %s1532_s14 = inlined_call_operand.hbm [shape: bf16[2,8,32], index: 14, kind: output, shape index: {}]  }
   0x1   :  { %v1085_v0 = vld [vmem:[%s1518_s0] sm:$0xff]  }
   0x2   :  { %v1274_v1 = vunpack.c.l.bf16 %v1085_v0 }
   0x4   :  { %v57_v2 = vsel %vm56_vm0, %v1274_v1, 0.0 }
   0x5   :  { %19 = vsyncpa [#allocation3], 0  ;;  %58 = vadd.xlane.f32.xlu0 %v57_v2  ;;  %v1278_v3 = vunpack.c.h.bf16 %v1085_v0  ;;  %v1182_v5 = vmov 32.0   ;;  %v1073_v22 = vld [vmem:[%s1522_s4 + $0x8] sm:$0xff]  ;;  %v1072_v24 = vld [vmem:[%s1522_s4] sm:$0xff]  ;;  %s1186_s23 = smov 56  }
   0x6   :  { %1110 = vrcp.f32 %v1182_v5  ;;  %148 = vmatpush.bf16.msra.mxu0 %v1073_v22  ;;  %v1102_v43 = vld [vmem:[%s1520_s2] ss:$0 sm:$0xff]  ;;  %s1183_s2 = smov 96   ;;  %vm167_vm8 = vcmask 64512   ;;  %vm240_vm9 = vcmask 1043456   ;;  %s1187_s26 = smov 80  }
   0x7   :  { %v60_v4 = vsel %vm56_vm0, %v1278_v3, 0.0  ;;  %v1103_v48 = vld [vmem:[%s1521_s3] ss:$0 sm:$0xff]  ;;  %s1184_s3 = smov 88   ;;  %s1189_s27 = smov 112  }
   0x8   :  { %v1104_v53 = vld [vmem:[%s1523_s5] ss:$0 sm:$0xff]  ;;  %s1185_s5 = smov 120   ;;  %s1190_s28 = smov 48  }
   0x9   :  { %s1191_s29 = smov 72   ;;  %s1192_s15 = smov 104  }
   0xa   :  { %149 = vmatpush.bf16.msra.mxu0 %v1072_v24  ;;  %s1193_s4 = smov 40  }
   0xc   :  { %v1111_v6 = vpop.eup %1110 }
   0xd   :  { %61 = vadd.xlane.f32.xlu0 %v60_v4  ;;  %v64_v7 = vmul.f32 32.0, %v1111_v6  ;;  %vm68_vm1 = vweird.f32 %v1111_v6 }
   0xf   :  { %v65_v8 = vsub.f32 1.0, %v64_v7 }
  0x11   :  { %v66_v9 = vmul.f32 %v1111_v6, %v65_v8 }
  0x13   :  { %v67_v10 = vadd.f32 %v1111_v6, %v66_v9 }
  0x15   :  { %v1282_v11 = vsel %vm68_vm1, %v1111_v6, %v67_v10 }
  0x78   :  { %v59_v12 = vpop.xlane.xlu0 %58 }
  0x79   :  { %v70_v13 = vmul.f32 %v1282_v11, %v59_v12 }
  0x7b   :  { %v72_v14 = vsub.f32 %v1274_v1, %v70_v13 }
  0x7d   :  { %v74_v15 = vmul.f32 %v72_v14, %v72_v14 }
  0x7f   :  { %v76_v16 = vsel %vm56_vm0, %v74_v15, 0.0  ;;  %v1332_v15 = vld [vmem:[%s1519_s1] sm:$0xff]  ;;  %s1188_s1 = smov 64  }
  0x80   :  { %77 = vadd.xlane.f32.xlu1 %v76_v16  ;;  %v62_v17 = vpop.xlane.xlu0 %61 }
  0x81   :  { %v71_v18 = vmul.f32 %v1282_v11, %v62_v17 }
  0x83   :  { %v73_v19 = vsub.f32 %v1278_v3, %v71_v18 }
  0x85   :  { %v75_v20 = vmul.f32 %v73_v19, %v73_v19 }
  0x87   :  { %v79_v21 = vsel %vm56_vm0, %v75_v20, 0.0 }
  0x88   :  { %80 = vadd.xlane.f32.xlu1 %v79_v21 }
  0xf3   :  { %v78_v23 = vpop.xlane.xlu1 %77 }
  0xf4   :  { %v82_v25 = vmul.f32 %v78_v23, %v1282_v11 }
  0xf6   :  { %v84_v26 = vadd.f32 1e-05, %v82_v25 }
  0xf8   :  { %1112 = vrsqrt.f32 %v84_v26  ;;  %vm92_vm3 = vweird.f32 %v84_v26 }
  0xfb   :  { %v81_v27 = vpop.xlane.xlu1 %80 }
  0xfc   :  { %v83_v28 = vmul.f32 %v81_v27, %v1282_v11 }
  0xfe   :  { %v1113_v29 = vpop.eup %1112  ;;  %v85_v30 = vadd.f32 1e-05, %v83_v28 }
  0xff   :  { %v87_v31 = vmul.f32 %v1113_v29, %v84_v26  ;;  %vm93_vm2 = vweird.f32 %v1113_v29 }
 0x100   :  { %1114 = vrsqrt.f32 %v85_v30  ;;  %vm94_vm4 = vmor %vm92_vm3, %vm93_vm2  ;;  %vm102_vm6 = vweird.f32 %v85_v30 }
 0x101   :  { %v88_v32 = vmul.f32 %v1113_v29, %v87_v31 }
 0x103   :  { %v89_v33 = vmul.f32 0.5, %v88_v32 }
 0x105   :  { %v90_v34 = vsub.f32 1.5, %v89_v33 }
 0x106   :  { %v1115_v35 = vpop.eup %1114 }
 0x107   :  { %v91_v36 = vmul.f32 %v1113_v29, %v90_v34  ;;  %v97_v37 = vmul.f32 %v1115_v35, %v85_v30  ;;  %vm103_vm5 = vweird.f32 %v1115_v35 }
 0x108   :  { %vm104_vm7 = vmor %vm102_vm6, %vm103_vm5 }
 0x109   :  { %v98_v38 = vmul.f32 %v1115_v35, %v97_v37  ;;  %v95_v39 = vsel %vm94_vm4, %v1113_v29, %v91_v36 }
 0x10a   :  { %v106_v42 = vmul.f32 %v95_v39, %v72_v14 }
 0x10b   :  { %v99_v40 = vmul.f32 0.5, %v98_v38 }
 0x10c   :  { %v111_v47 = vmul.f32 %v1102_v43, %v106_v42 }
 0x10d   :  { %v100_v41 = vsub.f32 1.5, %v99_v40 }
 0x10e   :  { %v116_v50 = vadd.f32 %v1103_v48, %v111_v47 }
 0x10f   :  { %v101_v44 = vmul.f32 %v1115_v35, %v100_v41 }
 0x111   :  { %v105_v45 = vsel %vm104_vm7, %v1115_v35, %v101_v44 }
 0x112   :  { %v107_v46 = vmul.f32 %v105_v45, %v73_v19 }
 0x114   :  { %v112_v49 = vmul.f32 %v1102_v43, %v107_v46 }
 0x116   :  { %v117_v51 = vadd.f32 %v1103_v48, %v112_v49 }
 0x118   :  { %v118_v52 = vpack.c.bf16 %v117_v51, %v116_v50 }
 0x11a   :  { %1008 = vmatmul.msk.bf16.vlgmr.msra.gmra.mxu0 %vm56_vm0, %v118_v52 }
 0x197   :  { %v151_v54 = vpop.f32.mrf.mxu0 }
 0x198   :  { %v152_v55 = vadd.f32 %v1104_v53, %v151_v54 }
 0x19a   :  { %v156_v56 = vpack.c.bf16 %v152_v55, %v152_v55 }
 0x19c   :  { %v163_v57 = vunpack.c.l.b16 %v156_v56 }
 0x19e   :  { %v1308_v58 = vpack.c.b16 %v163_v57, %v163_v57 }
 0x19f   :  { %v153_v59 = vpop.f32.mrf.mxu0 }
 0x1a0   :  { %v154_v60 = vadd.f32 %v1104_v53, %v153_v59  ;;  %165 = vrot.lane.b32.xlu0 %v1308_v58, %s1183_s2  ;;  %281 = vrot.lane.b32.xlu2 %v1308_v58, %s1184_s3 }
 0x1a2   :  { %v157_v61 = vpack.c.bf16 %v154_v60, %v154_v60 }
 0x1a4   :  { %v188_v62 = vunpack.c.l.b16 %v157_v61 }
 0x1a6   :  { %v1312_v63 = vpack.c.b16 %v188_v62, %v188_v62 }
 0x1a8   :  { %190 = vrot.lane.b32.xlu1 %v1312_v63, %s1183_s2  ;;  %279 = vrot.lane.b32.xlu2 %v1308_v58, %s1185_s5 }
 0x1b0   :  { %349 = vrot.lane.b32.xlu1 %v1308_v58, %s1186_s23  ;;  %304 = vrot.lane.b32.xlu2 %v1312_v63, %s1184_s3 }
 0x1b8   :  { %302 = vrot.lane.b32.xlu2 %v1312_v63, %s1185_s5 }
 0x1fa   :  { %v282_v0 = vpop.permute.xlu2 %281 }
 0x1fb   :  { %v287_v2 = vsel %vm167_vm8, %v282_v0, 0 }
 0x1fc   :  { %296 = vmatpush.bf16.xpose.msrb.mxu0 %v287_v2  ;;  %v159_v2 = vld [vmem:[%s1524_s6 + $0x4] sm:$0xf] }
 0x202   :  { %v280_v4 = vpop.permute.xlu2 %279 }
 0x203   :  { %1013 = vmatmul.msk.bf16.vlgmr.msrb.gmra.mxu0 %vm167_vm8, %v280_v4  ;;  %v396_v4 = vsel %vm240_vm9, %v159_v2, 0 }
 0x204   :  { %405 = vmatpush.bf16.msra.mxu0 %v396_v4 }
 0x20a   :  { %v305_v5 = vpop.permute.xlu2 %304 }
 0x20b   :  { %v310_v6 = vsel %vm167_vm8, %v305_v5, 0 }
 0x20c   :  { %319 = vmatpush.bf16.xpose.msra.mxu1 %v310_v6 }
 0x212   :  { %v166_v7 = vpop.permute.xlu0 %165  ;;  %v303_v8 = vpop.permute.xlu2 %302 }
 0x213   :  { %1014 = vmatmul.msk.bf16.vlgmr.msra.gmra.mxu1 %vm167_vm8, %v303_v8  ;;  %v172_v9 = vsel %vm167_vm8, %v166_v7, 0 }
 0x214   :  { %181 = vmatpush.bf16.xpose.msra.mxu2 %v172_v9 }
 0x21a   :  { %v191_v10 = vpop.permute.xlu1 %190 }
 0x21b   :  { %1009 = vmatmul.msk.bf16.vlgmr.msra.gmra.mxu2 %vm167_vm8, %v156_v56  ;;  %v196_v12 = vsel %vm167_vm8, %v191_v10, 0 }
 0x21c   :  { %205 = vmatpush.bf16.xpose.msrb.mxu2 %v196_v12 }
 0x222   :  { %v350_v13 = vpop.permute.xlu1 %349 }
 0x223   :  { %v355_v14 = vsel %vm240_vm9, %v350_v13, 0 }
 0x224   :  { %364 = vmatpush.bf16.msra.mxu2 %v355_v14 }
 0x22b   :  { %1010 = vmatmul.msk.bf16.vlgmr.msrb.gmra.mxu2 %vm167_vm8, %v157_v61 }
 0x280   :  { %v298_v16 = vpop.f32.mrf.mxu0 }
 0x281   :  { %v299_v17 = vadd.f32 %v298_v16, %v1332_v15 }
 0x283   :  { %v325_v18 = vsel %vm167_vm8, %v299_v17, -inf }
 0x284   :  { %326 = vmax.xlane.f32.xlu2 %v325_v18 }
 0x288   :  { %v300_v19 = vpop.f32.mrf.mxu0 }
 0x290   :  { %v321_v20 = vpop.f32.mrf.mxu1 }
 0x291   :  { %v322_v30 = vadd.f32 %v321_v20, %v1332_v15 }
 0x293   :  { %v328_v31 = vsel %vm167_vm8, %v322_v30, -inf }
 0x298   :  { %v323_v21 = vpop.f32.mrf.mxu1 }
 0x29c   :  { %434 = vrot.lane.b32.xlu2 %v1308_v58, %s1187_s26 }
 0x29e   :  { %v183_v22 = vpop.f32.mrf.mxu2 }
 0x29f   :  { %v184_v23 = vadd.f32 %v183_v22, %v1332_v15 }
 0x2a1   :  { %v211_v24 = vsel %vm167_vm8, %v184_v23, -inf }
 0x2a2   :  { %212 = vmax.xlane.f32.xlu1 %v211_v24 }
 0x2a6   :  { %v185_v25 = vpop.f32.mrf.mxu2 }
 0x2ae   :  { %v207_v26 = vpop.f32.mrf.mxu2 }
 0x2af   :  { %v208_v27 = vadd.f32 %v207_v26, %v1332_v15 }
 0x2b1   :  { %v214_v28 = vsel %vm167_vm8, %v208_v27, -inf }
 0x2b2   :  { %215 = vmax.xlane.f32.xlu1 %v214_v28 }
 0x2b6   :  { %v209_v29 = vpop.f32.mrf.mxu2 }
 0x2c5   :  { %329 = vmax.xlane.f32.xlu2 %v328_v31 }
 0x2cb   :  { %235 = vrot.lane.b32.xlu1 %v1308_v58, %s1188_s1 }
 0x2dd   :  { %257 = vrot.lane.b32.xlu2 %v1312_v63, %s1188_s1 }
 0x2e5   :  { %457 = vrot.lane.b32.xlu2 %v1312_v63, %s1187_s26 }
 0x2f7   :  { %v327_v32 = vpop.xlane.xlu2 %326 }
 0x2f8   :  { %v331_v33 = vsub.f32 %v299_v17, %v327_v32 }
 0x2fa   :  { %v333_v34 = vmul.f32 1.442695, %v331_v33 }
 0x2fc   :  { %1116 = vpow2.f32 %v333_v34  ;;  %v158_v34 = vld [vmem:[%s1524_s6] sm:$0xf] }
 0x2ff   :  { %v435_v35 = vpop.permute.xlu2 %434 }
 0x300   :  { %v440_v36 = vsel %vm167_vm8, %v435_v35, 0  ;;  %v416_v35 = vsel %vm240_vm9, %v158_v34, 0 }
 0x301   :  { %449 = vmatpush.bf16.xpose.msrb.mxu2 %v440_v36  ;;  %425 = vmatpush.bf16.msrb.mxu1 %v416_v35 }
 0x302   :  { %v1117_v37 = vpop.eup %1116 }
 0x303   :  { %v337_v38 = vsel %vm167_vm8, %v1117_v37, 0.0 }
 0x304   :  { %338 = vadd.xlane.f32.xlu0 %v337_v38 }
 0x315   :  { %v213_v39 = vpop.xlane.xlu1 %212 }
 0x316   :  { %v217_v44 = vsub.f32 %v184_v23, %v213_v39 }
 0x318   :  { %432 = vrot.lane.b32.xlu0 %v1308_v58, %s1189_s27  ;;  %v219_v46 = vmul.f32 1.442695, %v217_v44 }
 0x325   :  { %v216_v40 = vpop.xlane.xlu1 %215 }
 0x326   :  { %v218_v41 = vsub.f32 %v208_v27, %v216_v40 }
 0x328   :  { %v221_v42 = vmul.f32 1.442695, %v218_v41 }
 0x32a   :  { %1118 = vpow2.f32 %v221_v42 }
 0x32b   :  { %1120 = vpow2.f32 %v219_v46 }
 0x330   :  { %v1119_v43 = vpop.eup %1118 }
 0x331   :  { %v226_v45 = vsel %vm167_vm8, %v1119_v43, 0.0  ;;  %v1121_v51 = vpop.eup %1120 }
 0x332   :  { %227 = vadd.xlane.f32.xlu1 %v226_v45  ;;  %v223_v54 = vsel %vm167_vm8, %v1121_v51, 0.0 }
 0x338   :  { %v330_v47 = vpop.xlane.xlu2 %329 }
 0x339   :  { %v332_v48 = vsub.f32 %v322_v30, %v330_v47 }
 0x33b   :  { %v335_v49 = vmul.f32 1.442695, %v332_v48 }
 0x33d   :  { %v236_v50 = vpop.permute.xlu1 %235  ;;  %1122 = vpow2.f32 %v335_v49 }
 0x33e   :  { %v242_v52 = vsel %vm240_vm9, %v236_v50, 0 }
 0x33f   :  { %251 = vmatpush.bf16.msra.mxu3 %v242_v52 }
 0x340   :  { %v258_v53 = vpop.permute.xlu2 %257 }
 0x341   :  { %v263_v55 = vsel %vm240_vm9, %v258_v53, 0 }
 0x342   :  { %224 = vadd.xlane.f32.xlu0 %v223_v54 }
 0x343   :  { %272 = vmatpush.bf16.msrb.mxu3 %v263_v55  ;;  %v1123_v56 = vpop.eup %1122 }
 0x344   :  { %v340_v57 = vsel %vm167_vm8, %v1123_v56, 0.0 }
 0x348   :  { %v458_v18 = vpop.permute.xlu2 %457 }
 0x349   :  { %v463_v22 = vsel %vm167_vm8, %v458_v18, 0 }
 0x34a   :  { %341 = vadd.xlane.f32.xlu0 %v340_v57 }
 0x34b   :  { %455 = vrot.lane.b32.xlu1 %v1312_v63, %s1189_s27 }
 0x353   :  { %502 = vrot.lane.b32.xlu1 %v1308_v58, %s1190_s28 }
 0x35b   :  { %569 = vrot.lane.b32.xlu1 %v1308_v58, %s1191_s29 }
 0x35e   :  { %370 = vrot.lane.b32.xlu0 %v1312_v63, %s1186_s23 }
 0x363   :  { %592 = vrot.lane.b32.xlu1 %v1312_v63, %s1191_s29 }
 0x377   :  { %v339_v59 = vpop.xlane.xlu0 %338 }
 0x378   :  { %1124 = vrcp.f32 %v339_v59 }
 0x37e   :  { %v1125_v60 = vpop.eup %1124 }
 0x37f   :  { %v345_v61 = vmul.f32 %v1125_v60, %v1117_v37 }
 0x381   :  { %v347_v62 = vpack.c.bf16 %v345_v61, %v345_v61 }
 0x383   :  { %1015 = vmatmul.msk.bf16.vlgmr.msra.gmra.mxu2 %vm167_vm8, %v347_v62 }
 0x38a   :  { %v433_v0 = vpop.permute.xlu0 %432 }
 0x393   :  { %1019 = vmatmul.msk.bf16.vlgmr.msrb.gmra.mxu2 %vm167_vm8, %v433_v0 }
 0x3a5   :  { %v228_v5 = vpop.xlane.xlu1 %227 }
 0x3b5   :  { %v225_v6 = vpop.xlane.xlu0 %224 }
 0x3b6   :  { %1126 = vrcp.f32 %v225_v6 }
 0x3b7   :  { %1128 = vrcp.f32 %v228_v5 }
 0x3bc   :  { %v1127_v7 = vpop.eup %1126 }
 0x3bd   :  { %v456_v8 = vpop.permute.xlu1 %455  ;;  %v231_v9 = vmul.f32 %v1127_v7, %v1121_v51  ;;  %v1129_v14 = vpop.eup %1128 }
 0x3be   :  { %v342_v16 = vpop.xlane.xlu0 %341  ;;  %v232_v17 = vmul.f32 %v1129_v14, %v1119_v43 }
 0x3bf   :  { %v233_v10 = vpack.c.bf16 %v231_v9, %v231_v9  ;;  %1130 = vrcp.f32 %v342_v16 }
 0x3c0   :  { %v234_v19 = vpack.c.bf16 %v232_v17, %v232_v17 }
 0x3c1   :  { %1011 = vmatmul.msk.bf16.vlgmr.msra.gmra.mxu3 %vm167_vm8, %v233_v10 }
 0x3c5   :  { %v503_v12 = vpop.permute.xlu1 %502  ;;  %v1131_v23 = vpop.eup %1130 }
 0x3c6   :  { %v508_v13 = vsel %vm240_vm9, %v503_v12, 0  ;;  %v346_v24 = vmul.f32 %v1131_v23, %v1123_v56 }
 0x3c7   :  { %517 = vmatpush.bf16.msrb.mxu0 %v508_v13 }
 0x3c8   :  { %v348_v26 = vpack.c.bf16 %v346_v24, %v346_v24 }
 0x3cd   :  { %v570_v25 = vpop.permute.xlu1 %569 }
 0x3ce   :  { %v575_v27 = vsel %vm167_vm8, %v570_v25, 0 }
 0x3d0   :  { %v371_v20 = vpop.permute.xlu0 %370 }
 0x3d1   :  { %v376_v21 = vsel %vm240_vm9, %v371_v20, 0  ;;  %1012 = vmatmul.msk.bf16.vlgmr.msrb.gmra.mxu3 %vm167_vm8, %v234_v19 }
 0x3d2   :  { %385 = vmatpush.bf16.msra.mxu3 %v376_v21 }
 0x3d5   :  { %v593_v41 = vpop.permute.xlu1 %592 }
 0x3d6   :  { %472 = vmatpush.bf16.xpose.msrb.mxu3 %v463_v22  ;;  %v598_v44 = vsel %vm167_vm8, %v593_v41, 0 }
 0x3e1   :  { %1016 = vmatmul.msk.bf16.vlgmr.msra.gmra.mxu3 %vm167_vm8, %v348_v26 }
 0x3e2   :  { %584 = vmatpush.bf16.xpose.msra.mxu3 %v575_v27 }
 0x3f1   :  { %1020 = vmatmul.msk.bf16.vlgmr.msrb.gmra.mxu3 %vm167_vm8, %v456_v8 }
 0x406   :  { %v366_v28 = vpop.f32.mrf.mxu2 }
 0x40e   :  { %v368_v29 = vpop.f32.mrf.mxu2 }
 0x416   :  { %v451_v30 = vpop.f32.mrf.mxu2 }
 0x417   :  { %v452_v31 = vadd.f32 %v451_v30, %v1332_v15 }
 0x419   :  { %v478_v32 = vsel %vm167_vm8, %v452_v31, -inf }
 0x41a   :  { %479 = vmax.xlane.f32.xlu0 %v478_v32 }
 0x41e   :  { %v453_v33 = vpop.f32.mrf.mxu2 }
 0x41f   :  { %v160_v33 = vld [vmem:[%s1524_s6 + $0x8] sm:$0xf] }
 0x420   :  { %v549_v34 = vsel %vm240_vm9, %v160_v33, 0 }
 0x421   :  { %558 = vmatpush.bf16.msra.mxu2 %v549_v34 }
 0x42e   :  { %567 = vrot.lane.b32.xlu0 %v1308_v58, %s1192_s15 }
 0x444   :  { %v253_v36 = vpop.f32.mrf.mxu3 }
 0x44c   :  { %v255_v37 = vpop.f32.mrf.mxu3 }
 0x454   :  { %v274_v38 = vpop.f32.mrf.mxu3 }
 0x455   :  { %v278_v39 = vpack.c.bf16 %v274_v38, %v253_v36 }
 0x457   :  { %1018 = vmatmul.msk.bf16.vlgmr.msrb.gmra.mxu1 %vm167_vm8, %v278_v39 }
 0x45c   :  { %v276_v40 = vpop.f32.mrf.mxu3 }
 0x464   :  { %v387_v42 = vpop.f32.mrf.mxu3 }
 0x465   :  { %v391_v43 = vpack.c.bf16 %v387_v42, %v366_v28 }
 0x467   :  { %1017 = vmatmul.msk.bf16.vlgmr.msra.gmra.mxu0 %vm167_vm8, %v391_v43 }
 0x468   :  { %607 = vmatpush.bf16.xpose.msra.mxu0 %v598_v44 }
 0x46c   :  { %v389_v45 = vpop.f32.mrf.mxu3 }
 0x474   :  { %v474_v46 = vpop.f32.mrf.mxu3 }
 0x475   :  { %v475_v47 = vadd.f32 %v474_v46, %v1332_v15 }
 0x477   :  { %v481_v48 = vsel %vm167_vm8, %v475_v47, -inf }
 0x478   :  { %482 = vmax.xlane.f32.xlu1 %v481_v48 }
 0x47c   :  { %v476_v49 = vpop.f32.mrf.mxu3 }
 0x48d   :  { %v480_v50 = vpop.xlane.xlu0 %479 }
 0x48e   :  { %v484_v51 = vsub.f32 %v452_v31, %v480_v50 }
 0x490   :  { %v486_v52 = vmul.f32 1.442695, %v484_v51 }
 0x492   :  { %1132 = vpow2.f32 %v486_v52 }
 0x498   :  { %v1133_v53 = vpop.eup %1132 }
 0x499   :  { %v490_v54 = vsel %vm167_vm8, %v1133_v53, 0.0 }
 0x49a   :  { %491 = vadd.xlane.f32.xlu2 %v490_v54 }
 0x4a0   :  { %v568_v55 = vpop.permute.xlu0 %567 }
 0x4a1   :  { %1024 = vmatmul.msk.bf16.vlgmr.msra.gmra.mxu3 %vm167_vm8, %v568_v55 }
 0x4b2   :  { %590 = vrot.lane.b32.xlu2 %v1312_v63, %s1192_s15 }
 0x4ba   :  { %523 = vrot.lane.b32.xlu2 %v1312_v63, %s1190_s28 }
 0x4d4   :  { %v427_v56 = vpop.f32.mrf.mxu1 }
 0x4dc   :  { %v429_v35 = vpop.f32.mrf.mxu1 }
 0x4e4   :  { %v407_v57 = vpop.f32.mrf.mxu0 }
 0x4e5   :  { %v1396_v59 = vadd.f32 %v427_v56, %v407_v57 }
 0x4eb   :  { %v483_v60 = vpop.xlane.xlu1 %482 }
 0x4ec   :  { %v485_v61 = vsub.f32 %v475_v47, %v483_v60  ;;  %v1405_v21 = vpop.f32.mrf.mxu0 }
 0x4ee   :  { %v488_v62 = vmul.f32 1.442695, %v485_v61 }
 0x4f0   :  { %1134 = vpow2.f32 %v488_v62 }
 0x4f6   :  { %v1135_v0 = vpop.eup %1134 }
 0x4f7   :  { %v493_v2 = vsel %vm167_vm8, %v1135_v0, 0.0 }
 0x4f8   :  { %494 = vadd.xlane.f32.xlu0 %v493_v2 }
 0x50d   :  { %v492_v4 = vpop.xlane.xlu2 %491 }
 0x50e   :  { %1136 = vrcp.f32 %v492_v4 }
 0x514   :  { %v1137_v5 = vpop.eup %1136 }
 0x515   :  { %v498_v6 = vmul.f32 %v1137_v5, %v1133_v53  ;;  %v591_v7 = vpop.permute.xlu2 %590  ;;  %v1105_v5 = vld [vmem:[%s1525_s7] ss:$0 sm:$0xff] }
 0x517   :  { %v500_v8 = vpack.c.bf16 %v498_v6, %v498_v6 }
 0x519   :  { %1021 = vmatmul.msk.bf16.vlgmr.msrb.gmra.mxu0 %vm167_vm8, %v500_v8 }
 0x51d   :  { %v524_v9 = vpop.permute.xlu2 %523 }
 0x51e   :  { %v529_v10 = vsel %vm240_vm9, %v524_v9, 0 }
 0x51f   :  { %538 = vmatpush.bf16.msra.mxu1 %v529_v10 }
 0x524   :  { %v586_v12 = vpop.f32.mrf.mxu3 }
 0x525   :  { %v587_v13 = vadd.f32 %v586_v12, %v1332_v15 }
 0x527   :  { %v613_v14 = vsel %vm167_vm8, %v587_v13, -inf }
 0x528   :  { %614 = vmax.xlane.f32.xlu1 %v613_v14 }
 0x529   :  { %1025 = vmatmul.msk.bf16.vlgmr.msra.gmra.mxu0 %vm167_vm8, %v591_v7  ;;  %v430_v7 = vadd.f32 %v429_v35, %v1405_v21 }
 0x52c   :  { %v588_v16 = vpop.f32.mrf.mxu3 }
 0x56b   :  { %v495_v17 = vpop.xlane.xlu0 %494 }
 0x56c   :  { %1138 = vrcp.f32 %v495_v17 }
 0x572   :  { %v1139_v18 = vpop.eup %1138 }
 0x573   :  { %v499_v19 = vmul.f32 %v1139_v18, %v1135_v0 }
 0x575   :  { %v501_v20 = vpack.c.bf16 %v499_v19, %v499_v19 }
 0x577   :  { %1022 = vmatmul.msk.bf16.vlgmr.msra.gmra.mxu1 %vm167_vm8, %v501_v20 }
 0x596   :  { %v519_v22 = vpop.f32.mrf.mxu0 }
 0x59b   :  { %v615_v23 = vpop.xlane.xlu1 %614 }
 0x59c   :  { %v619_v24 = vsub.f32 %v587_v13, %v615_v23 }
 0x59e   :  { %v621_v25 = vmul.f32 1.442695, %v619_v24  ;;  %v521_v26 = vpop.f32.mrf.mxu0 }
 0x59f   :  { %v1075_v26 = vld [vmem:[%s1528_s10 + $0x8] sm:$0xff] }
 0x5a0   :  { %1140 = vpow2.f32 %v621_v25  ;;  %796 = vmatpush.bf16.msrb.mxu0 %v1075_v26  ;;  %v1078_v26 = vld [vmem:[%s1530_s12 + $0x10] sm:$0xff] }
 0x5a6   :  { %v1141_v27 = vpop.eup %1140  ;;  %v609_v28 = vpop.f32.mrf.mxu0 }
 0x5a7   :  { %v610_v29 = vadd.f32 %v609_v28, %v1332_v15  ;;  %v625_v30 = vsel %vm167_vm8, %v1141_v27, 0.0 }
 0x5a8   :  { %626 = vadd.xlane.f32.xlu0 %v625_v30  ;;  %v1074_v30 = vld [vmem:[%s1528_s10] sm:$0xff]  ;;  %s988_s10 = sshll.u32 %s1532_s14, 4  ;;  %s989_s10 = int_to_ptr.hbm [resolvable:$true] %s988_s10 }
 0x5a9   :  { %v616_v31 = vsel %vm167_vm8, %v610_v29, -inf  ;;  %797 = vmatpush.bf16.msrb.mxu0 %v1074_v30 }
 0x5aa   :  { %617 = vmax.xlane.f32.xlu2 %v616_v31 }
 0x5ae   :  { %v611_v32 = vpop.f32.mrf.mxu0 }
 0x5bc   :  { %637 = vrot.lane.b32.xlu0 %v1308_v58, %s1193_s4 }
 0x5f4   :  { %v540_v36 = vpop.f32.mrf.mxu1 }
 0x5f5   :  { %v544_v15 = vpack.c.bf16 %v540_v36, %v519_v22 }
 0x5f7   :  { %1023 = vmatmul.msk.bf16.vlgmr.msra.gmra.mxu2 %vm167_vm8, %v544_v15 }
 0x5fc   :  { %v542_v37 = vpop.f32.mrf.mxu1 }
 0x61b   :  { %v627_v41 = vpop.xlane.xlu0 %626 }
 0x61d   :  { %v618_v38 = vpop.xlane.xlu2 %617 }
 0x61e   :  { %v620_v39 = vsub.f32 %v610_v29, %v618_v38 }
 0x620   :  { %v623_v40 = vmul.f32 1.442695, %v620_v39 }
 0x622   :  { %1142 = vpow2.f32 %v623_v40 }
 0x623   :  { %1144 = vrcp.f32 %v627_v41 }
 0x628   :  { %v1143_v58 = vpop.eup %1142 }
 0x629   :  { %v628_v42 = vsel %vm167_vm8, %v1143_v58, 0.0  ;;  %v1145_v43 = vpop.eup %1144 }
 0x62a   :  { %629 = vadd.xlane.f32.xlu1 %v628_v42  ;;  %v633_v44 = vmul.f32 %v1145_v43, %v1141_v27 }
 0x62c   :  { %v635_v47 = vpack.c.bf16 %v633_v44, %v633_v44 }
 0x62e   :  { %v638_v45 = vpop.permute.xlu0 %637 }
 0x62f   :  { %v643_v46 = vsel %vm240_vm9, %v638_v45, 0 }
 0x630   :  { %652 = vmatpush.bf16.msrb.mxu1 %v643_v46 }
 0x633   :  { %1026 = vmatmul.msk.bf16.vlgmr.msrb.gmra.mxu1 %vm167_vm8, %v635_v47  ;;  %v1107_v47 = vld [vmem:[%s1527_s9] ss:$0 sm:$0xff] }
 0x643   :  { %658 = vrot.lane.b32.xlu1 %v1312_v63, %s1193_s4  ;;  %v161_v63 = vld [vmem:[%s1524_s6 + $0xc] sm:$0xf]  ;;  %s1194_s6 = smov [#allocation2]  }
 0x644   :  { %v684_v60 = vsel %vm240_vm9, %v161_v63, 0  ;;  %s986_s7 = sshll.u32 %s1194_s6, 4  ;;  %s987_s7 = int_to_ptr.vmem [resolvable:$true] %s986_s7 }
 0x645   :  { %693 = vmatpush.bf16.msrb.mxu3 %v684_v60 }
 0x67a   :  { %v560_v48 = vpop.f32.mrf.mxu2 }
 0x67b   :  { %v565_v49 = vadd.f32 %v560_v48, %v1396_v59 }
 0x682   :  { %v562_v59 = vpop.f32.mrf.mxu2 }
 0x683   :  { %v566_v9 = vadd.f32 %v562_v59, %v430_v7  ;;  %v1082_v59 = vld [vmem:[%s1530_s12 + $0x30] sm:$0xff] }
 0x69d   :  { %v630_v50 = vpop.xlane.xlu1 %629 }
 0x69e   :  { %1146 = vrcp.f32 %v630_v50 }
 0x6a4   :  { %v1147_v52 = vpop.eup %1146 }
 0x6a5   :  { %v634_v53 = vmul.f32 %v1147_v52, %v1143_v58 }
 0x6a7   :  { %v636_v56 = vpack.c.bf16 %v634_v53, %v634_v53 }
 0x6b0   :  { %v654_v51 = vpop.f32.mrf.mxu1 }
 0x6b5   :  { %v659_v54 = vpop.permute.xlu1 %658 }
 0x6b6   :  { %v664_v55 = vsel %vm240_vm9, %v659_v54, 0  ;;  %v1108_v54 = vld [vmem:[%s1529_s11] ss:$0 sm:$0xff] }
 0x6b7   :  { %673 = vmatpush.bf16.msrb.mxu2 %v664_v55 }
 0x6b8   :  { %v656_v57 = vpop.f32.mrf.mxu1 }
 0x6b9   :  { %v1083_v57 = vld [vmem:[%s1530_s12 + $0x38] sm:$0xff] }
 0x6ba   :  { %1027 = vmatmul.msk.bf16.vlgmr.msrb.gmra.mxu2 %vm167_vm8, %v636_v56  ;;  %961 = vmatpush.bf16.msra.mxu1 %v1083_v57 }
 0x6be   :  { %962 = vmatpush.bf16.msra.mxu1 %v1082_v59 }
 0x73d   :  { %v675_v61 = vpop.f32.mrf.mxu2 }
 0x73e   :  { %v679_v62 = vpack.c.bf16 %v675_v61, %v654_v51 }
 0x740   :  { %1028 = vmatmul.msk.bf16.vlgmr.msrb.gmra.mxu3 %vm167_vm8, %v679_v62  ;;  %vm979_vm8 = vcmask 257024  }
 0x745   :  { %v677_v0 = vpop.f32.mrf.mxu2 }
 0x7c3   :  { %v695_v2 = vpop.f32.mrf.mxu3 }
 0x7c4   :  { %v700_v4 = vadd.f32 %v695_v2, %v565_v49 }
 0x7c6   :  { %v702_v6 = vadd.f32 %v1274_v1, %v700_v4 }
 0x7c8   :  { %v1433_v8 = vadd.f32 %v1105_v5, %v702_v6 }
 0x7ca   :  { %v712_v10 = vsel %vm56_vm0, %v1433_v8, 0.0 }
 0x7cb   :  { %713 = vadd.xlane.f32.xlu2 %v712_v10  ;;  %v697_v12 = vpop.f32.mrf.mxu3 }
 0x7cc   :  { %v701_v13 = vadd.f32 %v697_v12, %v566_v9  ;;  %v1080_v12 = vld [vmem:[%s1530_s12 + $0x20] sm:$0xff] }
 0x7ce   :  { %v703_v14 = vadd.f32 %v1278_v3, %v701_v13 }
 0x7d0   :  { %v1438_v16 = vadd.f32 %v1105_v5, %v703_v14  ;;  %v1081_v5 = vld [vmem:[%s1530_s12 + $0x28] sm:$0xff] }
 0x7d1   :  { %963 = vmatpush.bf16.msra.mxu1 %v1081_v5 }
 0x7d2   :  { %v715_v17 = vsel %vm56_vm0, %v1438_v16, 0.0 }
 0x7d3   :  { %716 = vadd.xlane.f32.xlu2 %v715_v17 }
 0x7d5   :  { %964 = vmatpush.bf16.msra.mxu1 %v1080_v12 }
 0x83e   :  { %v714_v1 = vpop.xlane.xlu2 %713 }
 0x83f   :  { %v718_v18 = vmul.f32 %v714_v1, %v1282_v11 }
 0x841   :  { %v720_v19 = vsub.f32 %v1433_v8, %v718_v18 }
 0x843   :  { %v722_v20 = vmul.f32 %v720_v19, %v720_v19 }
 0x845   :  { %v724_v21 = vsel %vm56_vm0, %v722_v20, 0.0 }
 0x846   :  { %725 = vadd.xlane.f32.xlu1 %v724_v21  ;;  %v717_v22 = vpop.xlane.xlu2 %716 }
 0x847   :  { %v719_v23 = vmul.f32 %v717_v22, %v1282_v11 }
 0x849   :  { %v721_v3 = vsub.f32 %v1438_v16, %v719_v23 }
 0x84b   :  { %v723_v24 = vmul.f32 %v721_v3, %v721_v3 }
 0x84d   :  { %v727_v25 = vsel %vm56_vm0, %v723_v24, 0.0 }
 0x84e   :  { %728 = vadd.xlane.f32.xlu0 %v727_v25 }
 0x8b9   :  { %v726_v27 = vpop.xlane.xlu1 %725 }
 0x8ba   :  { %v730_v28 = vmul.f32 %v726_v27, %v1282_v11 }
 0x8bc   :  { %v732_v29 = vadd.f32 1e-05, %v730_v28 }
 0x8be   :  { %1148 = vrsqrt.f32 %v732_v29  ;;  %vm740_vm11 = vweird.f32 %v732_v29 }
 0x8c1   :  { %v729_v31 = vpop.xlane.xlu0 %728 }
 0x8c2   :  { %v731_v32 = vmul.f32 %v729_v31, %v1282_v11  ;;  %v1106_v11 = vld [vmem:[%s1526_s8] ss:$0 sm:$0xff] }
 0x8c4   :  { %v1149_v33 = vpop.eup %1148  ;;  %v733_v34 = vadd.f32 1e-05, %v731_v32 }
 0x8c5   :  { %v735_v35 = vmul.f32 %v1149_v33, %v732_v29  ;;  %vm741_vm10 = vweird.f32 %v1149_v33 }
 0x8c6   :  { %1150 = vrsqrt.f32 %v733_v34  ;;  %vm742_vm12 = vmor %vm740_vm11, %vm741_vm10  ;;  %vm750_vm14 = vweird.f32 %v733_v34 }
 0x8c7   :  { %v736_v36 = vmul.f32 %v1149_v33, %v735_v35 }
 0x8c9   :  { %v737_v15 = vmul.f32 0.5, %v736_v36 }
 0x8cb   :  { %v738_v37 = vsub.f32 1.5, %v737_v15 }
 0x8cc   :  { %v1151_v38 = vpop.eup %1150 }
 0x8cd   :  { %v739_v39 = vmul.f32 %v1149_v33, %v738_v37  ;;  %v745_v40 = vmul.f32 %v1151_v38, %v733_v34  ;;  %vm751_vm13 = vweird.f32 %v1151_v38  ;;  %v1077_v34 = vld [vmem:[%s1530_s12 + $0x8] sm:$0xff] }
 0x8ce   :  { %vm752_vm15 = vmor %vm750_vm14, %vm751_vm13 }
 0x8cf   :  { %v746_v41 = vmul.f32 %v1151_v38, %v745_v40  ;;  %v743_v58 = vsel %vm742_vm12, %v1149_v33, %v739_v39  ;;  %v1076_v39 = vld [vmem:[%s1530_s12] sm:$0xff] }
 0x8d0   :  { %v754_v44 = vmul.f32 %v743_v58, %v720_v19  ;;  %v1079_v19 = vld [vmem:[%s1530_s12 + $0x18] sm:$0xff] }
 0x8d1   :  { %v747_v42 = vmul.f32 0.5, %v746_v41  ;;  %965 = vmatpush.bf16.msra.mxu1 %v1079_v19 }
 0x8d2   :  { %v759_v48 = vmul.f32 %v1106_v11, %v754_v44 }
 0x8d3   :  { %v748_v43 = vsub.f32 1.5, %v747_v42 }
 0x8d4   :  { %v764_v51 = vadd.f32 %v1107_v47, %v759_v48 }
 0x8d5   :  { %v749_v45 = vmul.f32 %v1151_v38, %v748_v43  ;;  %966 = vmatpush.bf16.msra.mxu1 %v1078_v26 }
 0x8d7   :  { %v753_v46 = vsel %vm752_vm15, %v1151_v38, %v749_v45 }
 0x8d8   :  { %v755_v49 = vmul.f32 %v753_v46, %v721_v3 }
 0x8d9   :  { %967 = vmatpush.bf16.msra.mxu1 %v1077_v34 }
 0x8da   :  { %v760_v50 = vmul.f32 %v1106_v11, %v755_v49 }
 0x8dc   :  { %v765_v52 = vadd.f32 %v1107_v47, %v760_v50 }
 0x8dd   :  { %968 = vmatpush.bf16.msra.mxu1 %v1076_v39 }
 0x8de   :  { %v766_v53 = vpack.c.bf16 %v765_v52, %v764_v51 }
 0x8e0   :  { %1037 = vmatmul.msk.bf16.vlgmr.msrb.gmra.mxu0 %vm56_vm0, %v766_v53 }
 0x95d   :  { %v799_v55 = vpop.f32.mrf.mxu0 }
 0x95e   :  { %v1466_v56 = vadd.f32 %v1108_v54, %v799_v55 }
 0x960   :  { %v1472_v63 = vmul.f32 0.70710677, %v1466_v56 }
 0x962   :  { %v808_v60 = vmul.f32 %v1472_v63, %v1472_v63 }
 0x964   :  { %v809_v61 = vmin.f32 %v808_v60, 16.0 }
 0x965   :  { %v801_v62 = vpop.f32.mrf.mxu0 }
 0x966   :  { %v810_v0 = vmul.f32 2.1237322e-06, %v809_v61  ;;  %v821_v2 = vmul.f32 3.8918573e-05, %v809_v61  ;;  %v1479_v4 = vadd.f32 %v1108_v54, %v801_v62 }
 0x968   :  { %v811_v6 = vadd.f32 0.00028619796, %v810_v0  ;;  %v822_v7 = vadd.f32 0.001143296, %v821_v2  ;;  %v1485_v9 = vmul.f32 0.70710677, %v1479_v4 }
 0x96a   :  { %v823_v10 = vmul.f32 %v822_v7, %v809_v61  ;;  %v848_v13 = vmul.f32 %v1485_v9, %v1485_v9  ;;  %v812_v14 = vmul.f32 %v811_v6, %v809_v61 }
 0x96c   :  { %v824_v17 = vadd.f32 0.014752088, %v823_v10  ;;  %v849_v1 = vmin.f32 %v848_v13, 16.0  ;;  %v813_v22 = vadd.f32 0.0036580483, %v812_v14 }
 0x96e   :  { %v825_v18 = vmul.f32 %v824_v17, %v809_v61  ;;  %v850_v20 = vmul.f32 2.1237322e-06, %v849_v1  ;;  %v861_v21 = vmul.f32 3.8918573e-05, %v849_v1  ;;  %v814_v29 = vmul.f32 %v813_v22, %v809_v61 }
 0x970   :  { %v826_v23 = vadd.f32 0.112945676, %v825_v18  ;;  %v851_v3 = vadd.f32 0.00028619796, %v850_v20  ;;  %v862_v24 = vadd.f32 0.001143296, %v861_v21 }
 0x971   :  { %v815_v36 = vadd.f32 0.05243302, %v814_v29 }
 0x972   :  { %v827_v25 = vmul.f32 %v826_v23, %v809_v61  ;;  %v852_v27 = vmul.f32 %v851_v3, %v849_v1  ;;  %v863_v28 = vmul.f32 %v862_v24, %v849_v1  ;;  %v804_v23 = vmul.f32 0.5, %v1466_v56 }
 0x973   :  { %v816_v41 = vmul.f32 %v815_v36, %v809_v61  ;;  %v805_v3 = vmul.f32 0.5, %v1479_v4 }
 0x974   :  { %v828_v30 = vadd.f32 0.4994258, %v827_v25  ;;  %v853_v31 = vadd.f32 0.0036580483, %v852_v27  ;;  %v864_v32 = vadd.f32 0.014752088, %v863_v28 }
 0x975   :  { %v817_v44 = vadd.f32 0.18741608, %v816_v41  ;;  %v1109_v28 = vld [vmem:[%s1531_s13] ss:$0 sm:$0xff]  ;;  %s1195_s13 = smov 4  }
 0x976   :  { %v829_v33 = vmul.f32 %v828_v30, %v809_v61  ;;  %v865_v35 = vmul.f32 %v864_v32, %v849_v1  ;;  %v854_v37 = vmul.f32 %v853_v31, %v849_v1 }
 0x977   :  { %v818_v49 = vmul.f32 %v817_v44, %v809_v61 }
 0x978   :  { %v830_v15 = vadd.f32 1.0, %v829_v33  ;;  %v866_v38 = vadd.f32 0.112945676, %v865_v35  ;;  %v855_v58 = vadd.f32 0.05243302, %v854_v37 }
 0x979   :  { %v819_v55 = vadd.f32 1.1283791, %v818_v49 }
 0x97a   :  { %1152 = vrcp.f32 %v830_v15  ;;  %v867_v40 = vmul.f32 %v866_v38, %v849_v1  ;;  %v856_v46 = vmul.f32 %v855_v58, %v849_v1  ;;  %v842_v51 = vand.u32 2147483648, %v830_v15 }
 0x97b   :  { %v840_v53 = vand.u32 2147483647, %v830_v15  ;;  %vm836_vm1 = vweird.f32 %v830_v15  ;;  %v820_v5 = vmul.f32 %v819_v55, %v1472_v63 }
 0x97c   :  { %v868_v42 = vadd.f32 0.4994258, %v867_v40  ;;  %v857_v52 = vadd.f32 0.18741608, %v856_v46  ;;  %v843_v59 = vor.u32 1.1754944e-38, %v842_v51 }
 0x97d   :  { %vm841_vm3 = vcmp.eq.f32.partialorder %v840_v53, 8.507059e+37 }
 0x97e   :  { %v869_v43 = vmul.f32 %v868_v42, %v849_v1  ;;  %v858_v62 = vmul.f32 %v857_v52, %v849_v1 }
 0x980   :  { %v1153_v11 = vpop.eup %1152  ;;  %v870_v47 = vadd.f32 1.0, %v869_v43  ;;  %v859_v61 = vadd.f32 1.1283791, %v858_v62 }
 0x981   :  { %v832_v45 = vmul.f32 %v1153_v11, %v830_v15  ;;  %vm837_vm0 = vweird.f32 %v1153_v11 }
 0x982   :  { %1154 = vrcp.f32 %v870_v47  ;;  %vm838_vm2 = vmor %vm836_vm1, %vm837_vm0  ;;  %v882_v7 = vand.u32 2147483648, %v870_v47  ;;  %v880_v13 = vand.u32 2147483647, %v870_v47  ;;  %vm876_vm5 = vweird.f32 %v870_v47 }
 0x983   :  { %v833_v48 = vsub.f32 1.0, %v832_v45  ;;  %v860_v19 = vmul.f32 %v859_v61, %v1485_v9 }
 0x984   :  { %v883_v17 = vor.u32 1.1754944e-38, %v882_v7  ;;  %vm881_vm7 = vcmp.eq.f32.partialorder %v880_v13, 8.507059e+37 }
 0x985   :  { %v834_v50 = vmul.f32 %v1153_v11, %v833_v48 }
 0x987   :  { %v835_v54 = vadd.f32 %v1153_v11, %v834_v50 }
 0x988   :  { %v1155_v57 = vpop.eup %1154 }
 0x989   :  { %v839_v60 = vsel %vm838_vm2, %v1153_v11, %v835_v54  ;;  %v872_v0 = vmul.f32 %v1155_v57, %v870_v47  ;;  %vm877_vm4 = vweird.f32 %v1155_v57 }
 0x98a   :  { %v844_v2 = vsel %vm841_vm3, %v843_v59, %v839_v60  ;;  %vm878_vm6 = vmor %vm876_vm5, %vm877_vm4 }
 0x98b   :  { %v873_v6 = vsub.f32 1.0, %v872_v0  ;;  %v845_v10 = vmul.f32 %v844_v2, %v820_v5 }
 0x98d   :  { %v874_v12 = vmul.f32 %v1155_v57, %v873_v6  ;;  %v1038_v18 = vclamps-f32 %v845_v10, 1.0 }
 0x98f   :  { %v875_v14 = vadd.f32 %v1155_v57, %v874_v12  ;;  %v888_v22 = vadd.f32 1.0, %v1038_v18 }
 0x991   :  { %v879_v1 = vsel %vm878_vm6, %v1155_v57, %v875_v14  ;;  %v890_v25 = vmul.f32 %v888_v22, %v804_v23 }
 0x992   :  { %v884_v20 = vsel %vm881_vm7, %v883_v17, %v879_v1 }
 0x993   :  { %v885_v21 = vmul.f32 %v884_v20, %v860_v19 }
 0x995   :  { %v1039_v63 = vclamps-f32 %v885_v21, 1.0 }
 0x997   :  { %v889_v24 = vadd.f32 1.0, %v1039_v63 }
 0x999   :  { %v891_v26 = vmul.f32 %v889_v24, %v805_v3 }
 0x99b   :  { %v892_v27 = vpack.c.bf16 %v891_v26, %v890_v25 }
 0x99d   :  { %969 = vmatmul.bf16.vlgmr.msra.gmra.mxu1 %v892_v27 }
 0xa1a   :  { %v970_v9 = vpop.f32.mrf.mxu1 }
 0xa1b   :  { %v971_v29 = vadd.f32 %v1109_v28, %v970_v9 }
 0xa1d   :  { %v975_v30 = vadd.f32 %v971_v29, %v1433_v8 }
 0xa1f   :  { %v977_v31 = vpack.c.bf16 %v975_v30, %v975_v30 }
 0xa21   :  { %980 = vst.msk [vmem:[#allocation2] sm:$0xf] %vm979_vm8, %v977_v31 }
 0xa22   :  { %v972_v32 = vpop.f32.mrf.mxu1 }
 0xa23   :  { %v973_v56 = vadd.f32 %v1109_v28, %v972_v32 }
 0xa25   :  { %v976_v4 = vadd.f32 %v973_v56, %v1438_v16 }
 0xa27   :  { %v978_v33 = vpack.c.bf16 %v976_v4, %v976_v4 }
 0xa29   :  { %981 = vst.msk [vmem:[#allocation2 + $0x4] sm:$0xf] %vm979_vm8, %v978_v33 }
 0xa2a   :  { %994 = dma.vmem_to_hbm [thread:$0]  %s987_s7, 128, %s989_s10, [#allocation3], %s1188_s1, %s1188_s1, %s1195_s13  }
 0xa2b   :  { %1180 = dma.done.wait [#allocation3], 128  }
 0xa2c   :  { %1181 = vsyncadd [#allocation3], 4294967168 }
 0xa2d   :  { %999 = vsyncpa [#allocation3], 1 }

</bundles_post_ra>
